<compile_context>
chip_gen: v5e
topology: v5e:2x2
jax: 0.10.0
libtpu: 0.0.40
codegen_flags: <defaults>
</compile_context>

<pallas_src>
import math
from functools import partial

import jax
import jax.numpy as jnp
from jax.experimental import pallas as pl
from jax.experimental.pallas import tpu as pltpu


# ---------------------------------------------------------------------------
# Fused forward kernel: grid over encoder layers, activation resident in VMEM
# ---------------------------------------------------------------------------
def fused_forward_kernel(x_ref, pe_ref, bias_ref, pool_ref,
                         emb_w_ref, emb_b_ref,
                         wqkv_ref, bqkv_ref, wo_ref, bo_ref,
                         ln1w_ref, ln1b_ref, w1_ref, b1_ref,
                         w2_ref, b2_ref, ln2w_ref, ln2b_ref,
                         cls_w_ref, cls_b_ref,
                         o_ref,
                         act_ref,
                         *, nhead, eps=1e-5):
    layer = pl.program_id(0)
    last = pl.num_programs(0) - 1

    # ---- first grid step: embedding Linear + positional encoding ----------
    @pl.when(layer == 0)
    def _():
        emb = jnp.dot(x_ref[...], emb_w_ref[...],
                      preferred_element_type=jnp.float32)
        act_ref[...] = emb + emb_b_ref[...] + pe_ref[...]

    x = act_ref[...]                                  # (L*B, D), f32
    D = x.shape[-1]
    Dh = D // nhead
    scale = 1.0 / math.sqrt(Dh)
    bias = bias_ref[...]                              # (L*B, L*B) block-diag

    # ---- multi-head self-attention (softmax over the B axis, expressed as
    #      block-diagonal-masked attention over the flattened L*B rows) ------
    qkv = jnp.dot(x, wqkv_ref[0],
                  preferred_element_type=jnp.float32) + bqkv_ref[0]  # (L*B, 3D)

    head_outs = []
    for h in range(nhead):                            # static unroll over heads
        qh = qkv[:, h * Dh:(h + 1) * Dh]
        kh = qkv[:, D + h * Dh:D + (h + 1) * Dh]
        vh = qkv[:, 2 * D + h * Dh:2 * D + (h + 1) * Dh]
        s = jnp.einsum('id,jd->ij', qh, kh,
                       preferred_element_type=jnp.float32) * scale + bias
        s = s - jnp.max(s, axis=-1, keepdims=True)
        p = jnp.exp(s)
        # EUP reciprocal instead of a VPU divide.
        p = p * pl.reciprocal(jnp.sum(p, axis=-1, keepdims=True), approx=True)
        head_outs.append(jnp.dot(p, vh, preferred_element_type=jnp.float32))

    attn = jnp.concatenate(head_outs, axis=-1)        # (L*B, D)
    attn = jnp.dot(attn, wo_ref[0],
                   preferred_element_type=jnp.float32) + bo_ref[0]

    def layer_norm(z, w, b):
        mu = jnp.mean(z, axis=-1, keepdims=True)
        var = jnp.mean((z - mu) ** 2, axis=-1, keepdims=True)
        return (z - mu) * jax.lax.rsqrt(var + eps) * w + b

    x1 = layer_norm(x + attn, ln1w_ref[0], ln1b_ref[0])

    # ---- feed-forward ------------------------------------------------------
    h1 = jnp.dot(x1, w1_ref[0], preferred_element_type=jnp.float32) + b1_ref[0]
    h1 = jnp.maximum(h1, 0.0)
    ff = jnp.dot(h1, w2_ref[0], preferred_element_type=jnp.float32) + b2_ref[0]

    out = layer_norm(x1 + ff, ln2w_ref[0], ln2b_ref[0])
    act_ref[...] = out                                # carried to next layer

    # ---- last grid step: mean-over-L pooling + classifier ------------------
    @pl.when(layer == last)
    def _():
        pooled = jnp.dot(pool_ref[...], out,          # (B, L*B) @ (L*B, D)
                         preferred_element_type=jnp.float32)
        o_ref[...] = jnp.dot(pooled, cls_w_ref[...],
                             preferred_element_type=jnp.float32) + cls_b_ref[...]


# ---------------------------------------------------------------------------
# Wrapper: single pallas_call for the whole forward
# ---------------------------------------------------------------------------
def transformer_forward(x_bcl, emb_w, emb_b, cls_w, cls_b, stacked, pe, nhead):
    B, C, L = x_bcl.shape
    D = emb_w.shape[1]
    NC = cls_w.shape[1]
    LB = L * B
    num_layers = stacked[0].shape[0]

    # (B, C, L) --permute(2,0,1)--> (L, B, C) --flatten (L-major)--> (L*B, C)
    x_flat = jnp.transpose(x_bcl, (2, 0, 1)).reshape(LB, C)
    # positional encoding broadcast over B, flattened to match the activation
    pe_flat = jnp.broadcast_to(pe, (L, B, D)).reshape(LB, D)
    # block-diagonal additive attention bias: row i attends to j iff same l
    grp = jnp.arange(LB, dtype=jnp.int32) // B
    bias = jnp.where(grp[:, None] == grp[None, :], 0.0, -1e30
                     ).astype(jnp.float32)
    # mean-over-L pooling as a (B, L*B) averaging matrix
    pool = (jnp.arange(B)[:, None] == (jnp.arange(LB) % B)[None, :]
            ).astype(jnp.float32) / L

    def const_spec(a):
        return pl.BlockSpec(a.shape, lambda l, nd=a.ndim: (0,) * nd)

    def layer_spec(a):
        return pl.BlockSpec((1,) + a.shape[1:], lambda l: (l, 0, 0))

    in_specs = ([const_spec(a) for a in (x_flat, pe_flat, bias, pool,
                                         emb_w, emb_b)]
                + [layer_spec(a) for a in stacked]
                + [const_spec(cls_w), const_spec(cls_b)])

    grid_spec = pltpu.PrefetchScalarGridSpec(
        num_scalar_prefetch=0,
        grid=(num_layers,),
        in_specs=in_specs,
        out_specs=pl.BlockSpec((B, NC), lambda l: (0, 0)),
        scratch_shapes=[pltpu.VMEM((LB, D), jnp.float32)],
    )

    return pl.pallas_call(
        partial(fused_forward_kernel, nhead=nhead),
        out_shape=jax.ShapeDtypeStruct((B, NC), jnp.float32),
        grid_spec=grid_spec,
        compiler_params=pltpu.CompilerParams(
            dimension_semantics=("arbitrary",)),   # layers are sequential
    )(x_flat, pe_flat, bias, pool, emb_w, emb_b, *stacked, cls_w, cls_b)


# ---------------------------------------------------------------------------
# Parameter / buffer construction (deterministic, synthetic)
# ---------------------------------------------------------------------------
def make_positional_encoding(max_len, d_model):
    position = jnp.arange(max_len, dtype=jnp.float32)[:, None]
    div_term = jnp.exp(jnp.arange(0, d_model, 2, dtype=jnp.float32)
                       * (-math.log(10000.0) / d_model))
    pe = jnp.zeros((max_len, d_model), jnp.float32)
    pe = pe.at[:, 0::2].set(jnp.sin(position * div_term))
    pe = pe.at[:, 1::2].set(jnp.cos(position * div_term))
    return pe[:, None, :]                              # (max_len, 1, D)


def _linear_init(key, fan_in, fan_out):
    kw, kb = jax.random.split(key)
    lim = 1.0 / math.sqrt(fan_in)
    w = jax.random.uniform(kw, (fan_in, fan_out), jnp.float32, -lim, lim)
    b = jax.random.uniform(kb, (1, fan_out), jnp.float32, -lim, lim)
    return w, b


def init_params(key, input_dim, d_model, num_layers, dim_ff, num_classes):
    keys = jax.random.split(key, 2 + num_layers)
    emb_w, emb_b = _linear_init(keys[0], input_dim, d_model)
    cls_w, cls_b = _linear_init(keys[1], d_model, num_classes)
    per_layer = []
    for i in range(num_layers):
        k1, k2, k3, k4 = jax.random.split(keys[2 + i], 4)
        wqkv, bqkv = _linear_init(k1, d_model, 3 * d_model)
        wo, bo = _linear_init(k2, d_model, d_model)
        w1, b1 = _linear_init(k3, d_model, dim_ff)
        w2, b2 = _linear_init(k4, dim_ff, d_model)
        ln1w = jnp.ones((1, d_model), jnp.float32)
        ln1b = jnp.zeros((1, d_model), jnp.float32)
        ln2w = jnp.ones((1, d_model), jnp.float32)
        ln2b = jnp.zeros((1, d_model), jnp.float32)
        per_layer.append((wqkv, bqkv, wo, bo, ln1w, ln1b,
                          w1, b1, w2, b2, ln2w, ln2b))
    return emb_w, emb_b, cls_w, cls_b, per_layer


def stack_layers(per_layer):
    """Stack each per-layer weight along a new leading (layer) axis."""
    return tuple(jnp.stack(ws, axis=0) for ws in zip(*per_layer))


# ---------------------------------------------------------------------------
# Pure-JAX reference (same math, PyTorch-equivalent structure)
# ---------------------------------------------------------------------------
def reference_forward(x_bcl, emb_w, emb_b, cls_w, cls_b, layers, pe, nhead):
    x = jnp.transpose(x_bcl, (2, 0, 1)).astype(jnp.float32)   # (L, B, C)
    x = x @ emb_w + emb_b + pe
    D = emb_w.shape[1]
    Dh = D // nhead

    def ln(z, w, b):
        mu = z.mean(-1, keepdims=True)
        var = ((z - mu) ** 2).mean(-1, keepdims=True)
        return (z - mu) / jnp.sqrt(var + 1e-5) * w + b

    for (wqkv, bqkv, wo, bo, ln1w, ln1b, w1, b1, w2, b2, ln2w, ln2b) in layers:
        qkv = x @ wqkv + bqkv
        q, k, v = qkv[..., :D], qkv[..., D:2 * D], qkv[..., 2 * D:]
        outs = []
        for h in range(nhead):
            sl = slice(h * Dh, (h + 1) * Dh)
            s = jnp.einsum('lbd,lcd->lbc', q[..., sl], k[..., sl]) / math.sqrt(Dh)
            p = jax.nn.softmax(s, axis=-1)
            outs.append(jnp.einsum('lbc,lcd->lbd', p, v[..., sl]))
        attn = jnp.concatenate(outs, axis=-1) @ wo + bo
        x1 = ln(x + attn, ln1w, ln1b)
        ff = jnp.maximum(x1 @ w1 + b1, 0.0) @ w2 + b2
        x = ln(x1 + ff, ln2w, ln2b)
    pooled = x.mean(0)
    return pooled @ cls_w + cls_b


# ---------------------------------------------------------------------------
if __name__ == "__main__":
    # Small model config
    BATCH, INPUT_DIM, SEQ_LEN = 2, 8, 16
    D_MODEL, NHEAD, NUM_LAYERS = 32, 4, 2
    DIM_FF, NUM_CLASSES = 64, 8

    root = jax.random.PRNGKey(0)
    k_x, k_p = jax.random.split(root)

    # input x: (B, C, L), matching the PyTorch module's expected NCL input
    x = jax.random.normal(k_x, (BATCH, INPUT_DIM, SEQ_LEN), jnp.float32)

    emb_w, emb_b, cls_w, cls_b, per_layer = init_params(
        k_p, INPUT_DIM, D_MODEL, NUM_LAYERS, DIM_FF, NUM_CLASSES)
    stacked = stack_layers(per_layer)
    pe = make_positional_encoding(SEQ_LEN, D_MODEL)

    fwd = jax.jit(lambda xx: transformer_forward(
        xx, emb_w, emb_b, cls_w, cls_b, stacked, pe, NHEAD))

    out = fwd(x)
    jax.block_until_ready(out)
    assert out.shape == (BATCH, NUM_CLASSES), out.shape

    ref = reference_forward(x, emb_w, emb_b, cls_w, cls_b, per_layer, pe, NHEAD)
    assert jnp.allclose(out, ref, atol=2e-2, rtol=2e-2), (
        float(jnp.max(jnp.abs(out - ref))))

    print("KERNEL_OK")
</pallas_src>

<mosaic_0001>
module attributes {stable_mosaic.version = 11 : i64} {
  func.func @fused_forward_kernel(%arg0: i32, %arg1: memref<32x8xf32, #tpu.memory_space<vmem>>, %arg2: memref<32x32xf32, #tpu.memory_space<vmem>>, %arg3: memref<32x32xf32, #tpu.memory_space<vmem>>, %arg4: memref<2x32xf32, #tpu.memory_space<vmem>>, %arg5: memref<8x32xf32, #tpu.memory_space<vmem>>, %arg6: memref<1x32xf32, #tpu.memory_space<vmem>>, %arg7: memref<1x32x96xf32, #tpu.memory_space<vmem>>, %arg8: memref<1x1x96xf32, #tpu.memory_space<vmem>>, %arg9: memref<1x32x32xf32, #tpu.memory_space<vmem>>, %arg10: memref<1x1x32xf32, #tpu.memory_space<vmem>>, %arg11: memref<1x1x32xf32, #tpu.memory_space<vmem>>, %arg12: memref<1x1x32xf32, #tpu.memory_space<vmem>>, %arg13: memref<1x32x64xf32, #tpu.memory_space<vmem>>, %arg14: memref<1x1x64xf32, #tpu.memory_space<vmem>>, %arg15: memref<1x64x32xf32, #tpu.memory_space<vmem>>, %arg16: memref<1x1x32xf32, #tpu.memory_space<vmem>>, %arg17: memref<1x1x32xf32, #tpu.memory_space<vmem>>, %arg18: memref<1x1x32xf32, #tpu.memory_space<vmem>>, %arg19: memref<32x8xf32, #tpu.memory_space<vmem>>, %arg20: memref<1x8xf32, #tpu.memory_space<vmem>>, %arg21: memref<2x8xf32, #tpu.memory_space<vmem>>, %arg22: memref<32x32xf32, #tpu.memory_space<vmem>>) attributes {dimension_semantics = [#tpu.dimension_semantics<arbitrary>], iteration_bounds = array<i64: 2>, scalar_prefetch = 0 : i64, scratch_operands = 1 : i64, tpu.core_type = #tpu.core_type<tc>, window_params = [{pipeline_mode = #tpu.pipeline_mode<synchronous>, transform_indices = @transform_0, window_bounds = array<i64: 32, 8>}, {pipeline_mode = #tpu.pipeline_mode<synchronous>, transform_indices = @transform_1, window_bounds = array<i64: 32, 32>}, {pipeline_mode = #tpu.pipeline_mode<synchronous>, transform_indices = @transform_2, window_bounds = array<i64: 32, 32>}, {pipeline_mode = #tpu.pipeline_mode<synchronous>, transform_indices = @transform_3, window_bounds = array<i64: 2, 32>}, {pipeline_mode = #tpu.pipeline_mode<synchronous>, transform_indices = @transform_4, window_bounds = array<i64: 8, 32>}, {pipeline_mode = #tpu.pipeline_mode<synchronous>, transform_indices = @transform_5, window_bounds = array<i64: 1, 32>}, {transform_indices = @transform_6, window_bounds = array<i64: 1, 32, 96>}, {transform_indices = @transform_7, window_bounds = array<i64: 1, 1, 96>}, {transform_indices = @transform_8, window_bounds = array<i64: 1, 32, 32>}, {transform_indices = @transform_9, window_bounds = array<i64: 1, 1, 32>}, {transform_indices = @transform_10, window_bounds = array<i64: 1, 1, 32>}, {transform_indices = @transform_11, window_bounds = array<i64: 1, 1, 32>}, {transform_indices = @transform_12, window_bounds = array<i64: 1, 32, 64>}, {transform_indices = @transform_13, window_bounds = array<i64: 1, 1, 64>}, {transform_indices = @transform_14, window_bounds = array<i64: 1, 64, 32>}, {transform_indices = @transform_15, window_bounds = array<i64: 1, 1, 32>}, {transform_indices = @transform_16, window_bounds = array<i64: 1, 1, 32>}, {transform_indices = @transform_17, window_bounds = array<i64: 1, 1, 32>}, {pipeline_mode = #tpu.pipeline_mode<synchronous>, transform_indices = @transform_18, window_bounds = array<i64: 32, 8>}, {pipeline_mode = #tpu.pipeline_mode<synchronous>, transform_indices = @transform_19, window_bounds = array<i64: 1, 8>}, {pipeline_mode = #tpu.pipeline_mode<synchronous>, transform_indices = @transform_20, window_bounds = array<i64: 2, 8>}]} {
    %c0_i32 = arith.constant 0 : i32
    %0 = arith.cmpi eq, %arg0, %c0_i32 : i32
    %1 = arith.extui %0 : i1 to i32
    %c0_i32_0 = arith.constant 0 : i32
    %2 = arith.cmpi ne, %1, %c0_i32_0 : i32
    scf.if %2 {
      %c0_77 = arith.constant 0 : index
      %c0_78 = arith.constant 0 : index
      %166 = vector.load %arg1[%c0_77, %c0_78] : memref<32x8xf32, #tpu.memory_space<vmem>>, vector<32x8xf32>
      %c0_79 = arith.constant 0 : index
      %c0_80 = arith.constant 0 : index
      %167 = vector.load %arg5[%c0_79, %c0_80] : memref<8x32xf32, #tpu.memory_space<vmem>>, vector<8x32xf32>
      %cst_81 = arith.constant dense<0.000000e+00> : vector<32x32xf32>
      %168 = tpu.matmul %166, %167, %cst_81 {dimension_numbers = #tpu.dot_dimension_numbers<[1], [0], [0], [1], [0, 0, 1, 1], [], []>} : vector<32x8xf32>, vector<8x32xf32>, vector<32x32xf32> -> vector<32x32xf32>
      %c0_82 = arith.constant 0 : index
      %c0_83 = arith.constant 0 : index
      %169 = vector.load %arg6[%c0_82, %c0_83] : memref<1x32xf32, #tpu.memory_space<vmem>>, vector<1x32xf32>
      %170 = vector.broadcast %169 : vector<1x32xf32> to vector<32x32xf32>
      %171 = arith.addf %168, %170 : vector<32x32xf32>
      %c0_84 = arith.constant 0 : index
      %c0_85 = arith.constant 0 : index
      %172 = vector.load %arg2[%c0_84, %c0_85] : memref<32x32xf32, #tpu.memory_space<vmem>>, vector<32x32xf32>
      %173 = arith.addf %171, %172 : vector<32x32xf32>
      %c0_86 = arith.constant 0 : index
      %c0_87 = arith.constant 0 : index
      %174 = vector.load %arg22[%c0_86, %c0_87] : memref<32x32xf32, #tpu.memory_space<vmem>>, vector<32x32xf32>
      tpu.vector_store %arg22[%c0_86, %c0_87], %173 {strides = array<i32>} : memref<32x32xf32, #tpu.memory_space<vmem>>, vector<32x32xf32>,
    } else {
    }
    %c0 = arith.constant 0 : index
    %c0_1 = arith.constant 0 : index
    %3 = vector.load %arg22[%c0, %c0_1] : memref<32x32xf32, #tpu.memory_space<vmem>>, vector<32x32xf32>
    %c0_2 = arith.constant 0 : index
    %c0_3 = arith.constant 0 : index
    %4 = vector.load %arg3[%c0_2, %c0_3] : memref<32x32xf32, #tpu.memory_space<vmem>>, vector<32x32xf32>
    %c0_4 = arith.constant 0 : index
    %c0_5 = arith.constant 0 : index
    %c0_6 = arith.constant 0 : index
    %5 = vector.load %arg7[%c0_4, %c0_5, %c0_6] : memref<1x32x96xf32, #tpu.memory_space<vmem>>, vector<1x32x96xf32>
    %6 = vector.shape_cast %5 : vector<1x32x96xf32> to vector<32x96xf32>
    %cst = arith.constant dense<0.000000e+00> : vector<32x96xf32>
    %7 = tpu.matmul %3, %6, %cst {dimension_numbers = #tpu.dot_dimension_numbers<[1], [0], [0], [1], [0, 0, 1, 1], [], []>} : vector<32x32xf32>, vector<32x96xf32>, vector<32x96xf32> -> vector<32x96xf32>
    %c0_7 = arith.constant 0 : index
    %c0_8 = arith.constant 0 : index
    %c0_9 = arith.constant 0 : index
    %8 = vector.load %arg8[%c0_7, %c0_8, %c0_9] : memref<1x1x96xf32, #tpu.memory_space<vmem>>, vector<1x1x96xf32>
    %9 = vector.shape_cast %8 : vector<1x1x96xf32> to vector<1x96xf32>
    %10 = vector.broadcast %9 : vector<1x96xf32> to vector<32x96xf32>
    %11 = arith.addf %7, %10 : vector<32x96xf32>
    %12 = vector.extract_strided_slice %11 {offsets = [0, 0], sizes = [32, 8], strides = [1, 1]} : vector<32x96xf32> to vector<32x8xf32>
    %13 = vector.extract_strided_slice %11 {offsets = [0, 32], sizes = [32, 8], strides = [1, 1]} : vector<32x96xf32> to vector<32x8xf32>
    %14 = vector.extract_strided_slice %11 {offsets = [0, 64], sizes = [32, 8], strides = [1, 1]} : vector<32x96xf32> to vector<32x8xf32>
    "tpu.trace_start"() <{level = 10 : i32, message = "id,jd->ij"}> : () -> ()
    %cst_10 = arith.constant dense<0.000000e+00> : vector<32x32xf32>
    %15 = tpu.matmul %12, %13, %cst_10 {dimension_numbers = #tpu.dot_dimension_numbers<[1], [1], [0], [0], [0, 0, 1, 0], [], []>} : vector<32x8xf32>, vector<32x8xf32>, vector<32x32xf32> -> vector<32x32xf32>
    "tpu.trace_stop"() : () -> ()
    %cst_11 = arith.constant 0.353553385 : f32
    %16 = vector.broadcast %cst_11 : f32 to vector<32x32xf32>
    %17 = arith.mulf %15, %16 : vector<32x32xf32>
    %18 = arith.addf %17, %4 : vector<32x32xf32>
    %cst_12 = arith.constant dense<0xFF800000> : vector<32xf32>
    %19 = vector.multi_reduction <maximumf>, %18, %cst_12 [1] : vector<32x32xf32> to vector<32xf32>
    %20 = vector.shape_cast %19 : vector<32xf32> to vector<32x1xf32>
    %21 = vector.broadcast %20 : vector<32x1xf32> to vector<32x32xf32>
    %22 = arith.subf %18, %21 : vector<32x32xf32>
    %23 = math.exp %22 : vector<32x32xf32>
    %cst_13 = arith.constant dense<0.000000e+00> : vector<32xf32>
    %24 = vector.multi_reduction <add>, %23, %cst_13 [1] : vector<32x32xf32> to vector<32xf32>
    %25 = vector.shape_cast %24 : vector<32xf32> to vector<32x1xf32>
    %26 = tpu.reciprocal %25 {approx = true} : vector<32x1xf32> -> vector<32x1xf32>
    %27 = vector.broadcast %26 : vector<32x1xf32> to vector<32x32xf32>
    %28 = arith.mulf %23, %27 : vector<32x32xf32>
    %cst_14 = arith.constant dense<0.000000e+00> : vector<32x8xf32>
    %29 = tpu.matmul %28, %14, %cst_14 {dimension_numbers = #tpu.dot_dimension_numbers<[1], [0], [0], [1], [0, 0, 1, 1], [], []>} : vector<32x32xf32>, vector<32x8xf32>, vector<32x8xf32> -> vector<32x8xf32>
    %30 = vector.extract_strided_slice %11 {offsets = [0, 8], sizes = [32, 8], strides = [1, 1]} : vector<32x96xf32> to vector<32x8xf32>
    %31 = vector.extract_strided_slice %11 {offsets = [0, 40], sizes = [32, 8], strides = [1, 1]} : vector<32x96xf32> to vector<32x8xf32>
    %32 = vector.extract_strided_slice %11 {offsets = [0, 72], sizes = [32, 8], strides = [1, 1]} : vector<32x96xf32> to vector<32x8xf32>
    "tpu.trace_start"() <{level = 10 : i32, message = "id,jd->ij"}> : () -> ()
    %cst_15 = arith.constant dense<0.000000e+00> : vector<32x32xf32>
    %33 = tpu.matmul %30, %31, %cst_15 {dimension_numbers = #tpu.dot_dimension_numbers<[1], [1], [0], [0], [0, 0, 1, 0], [], []>} : vector<32x8xf32>, vector<32x8xf32>, vector<32x32xf32> -> vector<32x32xf32>
    "tpu.trace_stop"() : () -> ()
    %cst_16 = arith.constant 0.353553385 : f32
    %34 = vector.broadcast %cst_16 : f32 to vector<32x32xf32>
    %35 = arith.mulf %33, %34 : vector<32x32xf32>
    %36 = arith.addf %35, %4 : vector<32x32xf32>
    %cst_17 = arith.constant dense<0xFF800000> : vector<32xf32>
    %37 = vector.multi_reduction <maximumf>, %36, %cst_17 [1] : vector<32x32xf32> to vector<32xf32>
    %38 = vector.shape_cast %37 : vector<32xf32> to vector<32x1xf32>
    %39 = vector.broadcast %38 : vector<32x1xf32> to vector<32x32xf32>
    %40 = arith.subf %36, %39 : vector<32x32xf32>
    %41 = math.exp %40 : vector<32x32xf32>
    %cst_18 = arith.constant dense<0.000000e+00> : vector<32xf32>
    %42 = vector.multi_reduction <add>, %41, %cst_18 [1] : vector<32x32xf32> to vector<32xf32>
    %43 = vector.shape_cast %42 : vector<32xf32> to vector<32x1xf32>
    %44 = tpu.reciprocal %43 {approx = true} : vector<32x1xf32> -> vector<32x1xf32>
    %45 = vector.broadcast %44 : vector<32x1xf32> to vector<32x32xf32>
    %46 = arith.mulf %41, %45 : vector<32x32xf32>
    %cst_19 = arith.constant dense<0.000000e+00> : vector<32x8xf32>
    %47 = tpu.matmul %46, %32, %cst_19 {dimension_numbers = #tpu.dot_dimension_numbers<[1], [0], [0], [1], [0, 0, 1, 1], [], []>} : vector<32x32xf32>, vector<32x8xf32>, vector<32x8xf32> -> vector<32x8xf32>
    %48 = vector.extract_strided_slice %11 {offsets = [0, 16], sizes = [32, 8], strides = [1, 1]} : vector<32x96xf32> to vector<32x8xf32>
    %49 = vector.extract_strided_slice %11 {offsets = [0, 48], sizes = [32, 8], strides = [1, 1]} : vector<32x96xf32> to vector<32x8xf32>
    %50 = vector.extract_strided_slice %11 {offsets = [0, 80], sizes = [32, 8], strides = [1, 1]} : vector<32x96xf32> to vector<32x8xf32>
    "tpu.trace_start"() <{level = 10 : i32, message = "id,jd->ij"}> : () -> ()
    %cst_20 = arith.constant dense<0.000000e+00> : vector<32x32xf32>
    %51 = tpu.matmul %48, %49, %cst_20 {dimension_numbers = #tpu.dot_dimension_numbers<[1], [1], [0], [0], [0, 0, 1, 0], [], []>} : vector<32x8xf32>, vector<32x8xf32>, vector<32x32xf32> -> vector<32x32xf32>
    "tpu.trace_stop"() : () -> ()
    %cst_21 = arith.constant 0.353553385 : f32
    %52 = vector.broadcast %cst_21 : f32 to vector<32x32xf32>
    %53 = arith.mulf %51, %52 : vector<32x32xf32>
    %54 = arith.addf %53, %4 : vector<32x32xf32>
    %cst_22 = arith.constant dense<0xFF800000> : vector<32xf32>
    %55 = vector.multi_reduction <maximumf>, %54, %cst_22 [1] : vector<32x32xf32> to vector<32xf32>
    %56 = vector.shape_cast %55 : vector<32xf32> to vector<32x1xf32>
    %57 = vector.broadcast %56 : vector<32x1xf32> to vector<32x32xf32>
    %58 = arith.subf %54, %57 : vector<32x32xf32>
    %59 = math.exp %58 : vector<32x32xf32>
    %cst_23 = arith.constant dense<0.000000e+00> : vector<32xf32>
    %60 = vector.multi_reduction <add>, %59, %cst_23 [1] : vector<32x32xf32> to vector<32xf32>
    %61 = vector.shape_cast %60 : vector<32xf32> to vector<32x1xf32>
    %62 = tpu.reciprocal %61 {approx = true} : vector<32x1xf32> -> vector<32x1xf32>
    %63 = vector.broadcast %62 : vector<32x1xf32> to vector<32x32xf32>
    %64 = arith.mulf %59, %63 : vector<32x32xf32>
    %cst_24 = arith.constant dense<0.000000e+00> : vector<32x8xf32>
    %65 = tpu.matmul %64, %50, %cst_24 {dimension_numbers = #tpu.dot_dimension_numbers<[1], [0], [0], [1], [0, 0, 1, 1], [], []>} : vector<32x32xf32>, vector<32x8xf32>, vector<32x8xf32> -> vector<32x8xf32>
    %66 = vector.extract_strided_slice %11 {offsets = [0, 24], sizes = [32, 8], strides = [1, 1]} : vector<32x96xf32> to vector<32x8xf32>
    %67 = vector.extract_strided_slice %11 {offsets = [0, 56], sizes = [32, 8], strides = [1, 1]} : vector<32x96xf32> to vector<32x8xf32>
    %68 = vector.extract_strided_slice %11 {offsets = [0, 88], sizes = [32, 8], strides = [1, 1]} : vector<32x96xf32> to vector<32x8xf32>
    "tpu.trace_start"() <{level = 10 : i32, message = "id,jd->ij"}> : () -> ()
    %cst_25 = arith.constant dense<0.000000e+00> : vector<32x32xf32>
    %69 = tpu.matmul %66, %67, %cst_25 {dimension_numbers = #tpu.dot_dimension_numbers<[1], [1], [0], [0], [0, 0, 1, 0], [], []>} : vector<32x8xf32>, vector<32x8xf32>, vector<32x32xf32> -> vector<32x32xf32>
    "tpu.trace_stop"() : () -> ()
    %cst_26 = arith.constant 0.353553385 : f32
    %70 = vector.broadcast %cst_26 : f32 to vector<32x32xf32>
    %71 = arith.mulf %69, %70 : vector<32x32xf32>
    %72 = arith.addf %71, %4 : vector<32x32xf32>
    %cst_27 = arith.constant dense<0xFF800000> : vector<32xf32>
    %73 = vector.multi_reduction <maximumf>, %72, %cst_27 [1] : vector<32x32xf32> to vector<32xf32>
    %74 = vector.shape_cast %73 : vector<32xf32> to vector<32x1xf32>
    %75 = vector.broadcast %74 : vector<32x1xf32> to vector<32x32xf32>
    %76 = arith.subf %72, %75 : vector<32x32xf32>
    %77 = math.exp %76 : vector<32x32xf32>
    %cst_28 = arith.constant dense<0.000000e+00> : vector<32xf32>
    %78 = vector.multi_reduction <add>, %77, %cst_28 [1] : vector<32x32xf32> to vector<32xf32>
    %79 = vector.shape_cast %78 : vector<32xf32> to vector<32x1xf32>
    %80 = tpu.reciprocal %79 {approx = true} : vector<32x1xf32> -> vector<32x1xf32>
    %81 = vector.broadcast %80 : vector<32x1xf32> to vector<32x32xf32>
    %82 = arith.mulf %77, %81 : vector<32x32xf32>
    %cst_29 = arith.constant dense<0.000000e+00> : vector<32x8xf32>
    %83 = tpu.matmul %82, %68, %cst_29 {dimension_numbers = #tpu.dot_dimension_numbers<[1], [0], [0], [1], [0, 0, 1, 1], [], []>} : vector<32x32xf32>, vector<32x8xf32>, vector<32x8xf32> -> vector<32x8xf32>
    %84 = tpu.concatenate %29, %47, %65, %83 in 1 : vector<32x8xf32>, vector<32x8xf32>, vector<32x8xf32>, vector<32x8xf32> -> vector<32x32xf32>
    %c0_30 = arith.constant 0 : index
    %c0_31 = arith.constant 0 : index
    %c0_32 = arith.constant 0 : index
    %85 = vector.load %arg9[%c0_30, %c0_31, %c0_32] : memref<1x32x32xf32, #tpu.memory_space<vmem>>, vector<1x32x32xf32>
    %86 = vector.shape_cast %85 : vector<1x32x32xf32> to vector<32x32xf32>
    %cst_33 = arith.constant dense<0.000000e+00> : vector<32x32xf32>
    %87 = tpu.matmul %84, %86, %cst_33 {dimension_numbers = #tpu.dot_dimension_numbers<[1], [0], [0], [1], [0, 0, 1, 1], [], []>} : vector<32x32xf32>, vector<32x32xf32>, vector<32x32xf32> -> vector<32x32xf32>
    %c0_34 = arith.constant 0 : index
    %c0_35 = arith.constant 0 : index
    %c0_36 = arith.constant 0 : index
    %88 = vector.load %arg10[%c0_34, %c0_35, %c0_36] : memref<1x1x32xf32, #tpu.memory_space<vmem>>, vector<1x1x32xf32>
    %89 = vector.shape_cast %88 : vector<1x1x32xf32> to vector<1x32xf32>
    %90 = vector.broadcast %89 : vector<1x32xf32> to vector<32x32xf32>
    %91 = arith.addf %87, %90 : vector<32x32xf32>
    %92 = arith.addf %3, %91 : vector<32x32xf32>
    %c0_37 = arith.constant 0 : index
    %c0_38 = arith.constant 0 : index
    %c0_39 = arith.constant 0 : index
    %93 = vector.load %arg11[%c0_37, %c0_38, %c0_39] : memref<1x1x32xf32, #tpu.memory_space<vmem>>, vector<1x1x32xf32>
    %94 = vector.shape_cast %93 : vector<1x1x32xf32> to vector<1x32xf32>
    %c0_40 = arith.constant 0 : index
    %c0_41 = arith.constant 0 : index
    %c0_42 = arith.constant 0 : index
    %95 = vector.load %arg12[%c0_40, %c0_41, %c0_42] : memref<1x1x32xf32, #tpu.memory_space<vmem>>, vector<1x1x32xf32>
    %96 = vector.shape_cast %95 : vector<1x1x32xf32> to vector<1x32xf32>
    %cst_43 = arith.constant dense<0.000000e+00> : vector<32xf32>
    %97 = vector.multi_reduction <add>, %92, %cst_43 [1] : vector<32x32xf32> to vector<32xf32>
    %98 = vector.shape_cast %97 : vector<32xf32> to vector<32x1xf32>
    %cst_44 = arith.constant 3.200000e+01 : f32
    %99 = vector.broadcast %cst_44 : f32 to vector<32x1xf32>
    %100 = arith.divf %98, %99 : vector<32x1xf32>
    %101 = vector.broadcast %100 : vector<32x1xf32> to vector<32x32xf32>
    %102 = arith.subf %92, %101 : vector<32x32xf32>
    %103 = arith.mulf %102, %102 : vector<32x32xf32>
    %cst_45 = arith.constant dense<0.000000e+00> : vector<32xf32>
    %104 = vector.multi_reduction <add>, %103, %cst_45 [1] : vector<32x32xf32> to vector<32xf32>
    %105 = vector.shape_cast %104 : vector<32xf32> to vector<32x1xf32>
    %cst_46 = arith.constant 3.200000e+01 : f32
    %106 = vector.broadcast %cst_46 : f32 to vector<32x1xf32>
    %107 = arith.divf %105, %106 : vector<32x1xf32>
    %108 = vector.broadcast %100 : vector<32x1xf32> to vector<32x32xf32>
    %109 = arith.subf %92, %108 : vector<32x32xf32>
    %cst_47 = arith.constant 9.99999974E-6 : f32
    %110 = vector.broadcast %cst_47 : f32 to vector<32x1xf32>
    %111 = arith.addf %107, %110 : vector<32x1xf32>
    %112 = math.rsqrt %111 : vector<32x1xf32>
    %113 = vector.broadcast %112 : vector<32x1xf32> to vector<32x32xf32>
    %114 = arith.mulf %109, %113 : vector<32x32xf32>
    %115 = vector.broadcast %94 : vector<1x32xf32> to vector<32x32xf32>
    %116 = arith.mulf %114, %115 : vector<32x32xf32>
    %117 = vector.broadcast %96 : vector<1x32xf32> to vector<32x32xf32>
    %118 = arith.addf %116, %117 : vector<32x32xf32>
    %c0_48 = arith.constant 0 : index
    %c0_49 = arith.constant 0 : index
    %c0_50 = arith.constant 0 : index
    %119 = vector.load %arg13[%c0_48, %c0_49, %c0_50] : memref<1x32x64xf32, #tpu.memory_space<vmem>>, vector<1x32x64xf32>
    %120 = vector.shape_cast %119 : vector<1x32x64xf32> to vector<32x64xf32>
    %cst_51 = arith.constant dense<0.000000e+00> : vector<32x64xf32>
    %121 = tpu.matmul %118, %120, %cst_51 {dimension_numbers = #tpu.dot_dimension_numbers<[1], [0], [0], [1], [0, 0, 1, 1], [], []>} : vector<32x32xf32>, vector<32x64xf32>, vector<32x64xf32> -> vector<32x64xf32>
    %c0_52 = arith.constant 0 : index
    %c0_53 = arith.constant 0 : index
    %c0_54 = arith.constant 0 : index
    %122 = vector.load %arg14[%c0_52, %c0_53, %c0_54] : memref<1x1x64xf32, #tpu.memory_space<vmem>>, vector<1x1x64xf32>
    %123 = vector.shape_cast %122 : vector<1x1x64xf32> to vector<1x64xf32>
    %124 = vector.broadcast %123 : vector<1x64xf32> to vector<32x64xf32>
    %125 = arith.addf %121, %124 : vector<32x64xf32>
    %cst_55 = arith.constant 0.000000e+00 : f32
    %126 = vector.broadcast %cst_55 : f32 to vector<32x64xf32>
    %127 = arith.maximumf %125, %126 : vector<32x64xf32>
    %c0_56 = arith.constant 0 : index
    %c0_57 = arith.constant 0 : index
    %c0_58 = arith.constant 0 : index
    %128 = vector.load %arg15[%c0_56, %c0_57, %c0_58] : memref<1x64x32xf32, #tpu.memory_space<vmem>>, vector<1x64x32xf32>
    %129 = vector.shape_cast %128 : vector<1x64x32xf32> to vector<64x32xf32>
    %cst_59 = arith.constant dense<0.000000e+00> : vector<32x32xf32>
    %130 = tpu.matmul %127, %129, %cst_59 {dimension_numbers = #tpu.dot_dimension_numbers<[1], [0], [0], [1], [0, 0, 1, 1], [], []>} : vector<32x64xf32>, vector<64x32xf32>, vector<32x32xf32> -> vector<32x32xf32>
    %c0_60 = arith.constant 0 : index
    %c0_61 = arith.constant 0 : index
    %c0_62 = arith.constant 0 : index
    %131 = vector.load %arg16[%c0_60, %c0_61, %c0_62] : memref<1x1x32xf32, #tpu.memory_space<vmem>>, vector<1x1x32xf32>
    %132 = vector.shape_cast %131 : vector<1x1x32xf32> to vector<1x32xf32>
    %133 = vector.broadcast %132 : vector<1x32xf32> to vector<32x32xf32>
    %134 = arith.addf %130, %133 : vector<32x32xf32>
    %135 = arith.addf %118, %134 : vector<32x32xf32>
    %c0_63 = arith.constant 0 : index
    %c0_64 = arith.constant 0 : index
    %c0_65 = arith.constant 0 : index
    %136 = vector.load %arg17[%c0_63, %c0_64, %c0_65] : memref<1x1x32xf32, #tpu.memory_space<vmem>>, vector<1x1x32xf32>
    %137 = vector.shape_cast %136 : vector<1x1x32xf32> to vector<1x32xf32>
    %c0_66 = arith.constant 0 : index
    %c0_67 = arith.constant 0 : index
    %c0_68 = arith.constant 0 : index
    %138 = vector.load %arg18[%c0_66, %c0_67, %c0_68] : memref<1x1x32xf32, #tpu.memory_space<vmem>>, vector<1x1x32xf32>
    %139 = vector.shape_cast %138 : vector<1x1x32xf32> to vector<1x32xf32>
    %cst_69 = arith.constant dense<0.000000e+00> : vector<32xf32>
    %140 = vector.multi_reduction <add>, %135, %cst_69 [1] : vector<32x32xf32> to vector<32xf32>
    %141 = vector.shape_cast %140 : vector<32xf32> to vector<32x1xf32>
    %cst_70 = arith.constant 3.200000e+01 : f32
    %142 = vector.broadcast %cst_70 : f32 to vector<32x1xf32>
    %143 = arith.divf %141, %142 : vector<32x1xf32>
    %144 = vector.broadcast %143 : vector<32x1xf32> to vector<32x32xf32>
    %145 = arith.subf %135, %144 : vector<32x32xf32>
    %146 = arith.mulf %145, %145 : vector<32x32xf32>
    %cst_71 = arith.constant dense<0.000000e+00> : vector<32xf32>
    %147 = vector.multi_reduction <add>, %146, %cst_71 [1] : vector<32x32xf32> to vector<32xf32>
    %148 = vector.shape_cast %147 : vector<32xf32> to vector<32x1xf32>
    %cst_72 = arith.constant 3.200000e+01 : f32
    %149 = vector.broadcast %cst_72 : f32 to vector<32x1xf32>
    %150 = arith.divf %148, %149 : vector<32x1xf32>
    %151 = vector.broadcast %143 : vector<32x1xf32> to vector<32x32xf32>
    %152 = arith.subf %135, %151 : vector<32x32xf32>
    %cst_73 = arith.constant 9.99999974E-6 : f32
    %153 = vector.broadcast %cst_73 : f32 to vector<32x1xf32>
    %154 = arith.addf %150, %153 : vector<32x1xf32>
    %155 = math.rsqrt %154 : vector<32x1xf32>
    %156 = vector.broadcast %155 : vector<32x1xf32> to vector<32x32xf32>
    %157 = arith.mulf %152, %156 : vector<32x32xf32>
    %158 = vector.broadcast %137 : vector<1x32xf32> to vector<32x32xf32>
    %159 = arith.mulf %157, %158 : vector<32x32xf32>
    %160 = vector.broadcast %139 : vector<1x32xf32> to vector<32x32xf32>
    %161 = arith.addf %159, %160 : vector<32x32xf32>
    %c0_74 = arith.constant 0 : index
    %c0_75 = arith.constant 0 : index
    %162 = vector.load %arg22[%c0_74, %c0_75] : memref<32x32xf32, #tpu.memory_space<vmem>>, vector<32x32xf32>
    tpu.vector_store %arg22[%c0_74, %c0_75], %161 {strides = array<i32>} : memref<32x32xf32, #tpu.memory_space<vmem>>, vector<32x32xf32>,
    %c1_i32 = arith.constant 1 : i32
    %163 = arith.cmpi eq, %arg0, %c1_i32 : i32
    %164 = arith.extui %163 : i1 to i32
    %c0_i32_76 = arith.constant 0 : i32
    %165 = arith.cmpi ne, %164, %c0_i32_76 : i32
    scf.if %165 {
      %c0_77 = arith.constant 0 : index
      %c0_78 = arith.constant 0 : index
      %166 = vector.load %arg4[%c0_77, %c0_78] : memref<2x32xf32, #tpu.memory_space<vmem>>, vector<2x32xf32>
      %cst_79 = arith.constant dense<0.000000e+00> : vector<2x32xf32>
      %167 = tpu.matmul %166, %161, %cst_79 {dimension_numbers = #tpu.dot_dimension_numbers<[1], [0], [0], [1], [0, 0, 1, 1], [], []>} : vector<2x32xf32>, vector<32x32xf32>, vector<2x32xf32> -> vector<2x32xf32>
      %c0_80 = arith.constant 0 : index
      %c0_81 = arith.constant 0 : index
      %168 = vector.load %arg19[%c0_80, %c0_81] : memref<32x8xf32, #tpu.memory_space<vmem>>, vector<32x8xf32>
      %cst_82 = arith.constant dense<0.000000e+00> : vector<2x8xf32>
      %169 = tpu.matmul %167, %168, %cst_82 {dimension_numbers = #tpu.dot_dimension_numbers<[1], [0], [0], [1], [0, 0, 1, 1], [], []>} : vector<2x32xf32>, vector<32x8xf32>, vector<2x8xf32> -> vector<2x8xf32>
      %c0_83 = arith.constant 0 : index
      %c0_84 = arith.constant 0 : index
      %170 = vector.load %arg20[%c0_83, %c0_84] : memref<1x8xf32, #tpu.memory_space<vmem>>, vector<1x8xf32>
      %171 = vector.broadcast %170 : vector<1x8xf32> to vector<2x8xf32>
      %172 = arith.addf %169, %171 : vector<2x8xf32>
      %c0_85 = arith.constant 0 : index
      %c0_86 = arith.constant 0 : index
      %173 = vector.load %arg21[%c0_85, %c0_86] : memref<2x8xf32, #tpu.memory_space<vmem>>, vector<2x8xf32>
      tpu.vector_store %arg21[%c0_85, %c0_86], %172 {strides = array<i32>} : memref<2x8xf32, #tpu.memory_space<vmem>>, vector<2x8xf32>,
    } else {
    }
    return
  }
  func.func @transform_0(%arg0: i32) -> (i32, i32) {
    %c0_i32 = arith.constant 0 : i32
    %c0_i32_0 = arith.constant 0 : i32
    %c0_i32_1 = arith.constant 0 : i32
    return %c0_i32, %c0_i32_0 : i32, i32
  }
  func.func @transform_1(%arg0: i32) -> (i32, i32) {
    %c0_i32 = arith.constant 0 : i32
    %c0_i32_0 = arith.constant 0 : i32
    %c0_i32_1 = arith.constant 0 : i32
    return %c0_i32, %c0_i32_0 : i32, i32
  }
  func.func @transform_2(%arg0: i32) -> (i32, i32) {
    %c0_i32 = arith.constant 0 : i32
    %c0_i32_0 = arith.constant 0 : i32
    %c0_i32_1 = arith.constant 0 : i32
    return %c0_i32, %c0_i32_0 : i32, i32
  }
  func.func @transform_3(%arg0: i32) -> (i32, i32) {
    %c0_i32 = arith.constant 0 : i32
    %c0_i32_0 = arith.constant 0 : i32
    %c0_i32_1 = arith.constant 0 : i32
    return %c0_i32, %c0_i32_0 : i32, i32
  }
  func.func @transform_4(%arg0: i32) -> (i32, i32) {
    %c0_i32 = arith.constant 0 : i32
    %c0_i32_0 = arith.constant 0 : i32
    %c0_i32_1 = arith.constant 0 : i32
    return %c0_i32, %c0_i32_0 : i32, i32
  }
  func.func @transform_5(%arg0: i32) -> (i32, i32) {
    %c0_i32 = arith.constant 0 : i32
    %c0_i32_0 = arith.constant 0 : i32
    %c0_i32_1 = arith.constant 0 : i32
    return %c0_i32, %c0_i32_0 : i32, i32
  }
  func.func @transform_6(%arg0: i32) -> (i32, i32, i32) {
    %c0_i32 = arith.constant 0 : i32
    %c0_i32_0 = arith.constant 0 : i32
    %c0_i32_1 = arith.constant 0 : i32
    return %arg0, %c0_i32, %c0_i32_0 : i32, i32, i32
  }
  func.func @transform_7(%arg0: i32) -> (i32, i32, i32) {
    %c0_i32 = arith.constant 0 : i32
    %c0_i32_0 = arith.constant 0 : i32
    %c0_i32_1 = arith.constant 0 : i32
    return %arg0, %c0_i32, %c0_i32_0 : i32, i32, i32
  }
  func.func @transform_8(%arg0: i32) -> (i32, i32, i32) {
    %c0_i32 = arith.constant 0 : i32
    %c0_i32_0 = arith.constant 0 : i32
    %c0_i32_1 = arith.constant 0 : i32
    return %arg0, %c0_i32, %c0_i32_0 : i32, i32, i32
  }
  func.func @transform_9(%arg0: i32) -> (i32, i32, i32) {
    %c0_i32 = arith.constant 0 : i32
    %c0_i32_0 = arith.constant 0 : i32
    %c0_i32_1 = arith.constant 0 : i32
    return %arg0, %c0_i32, %c0_i32_0 : i32, i32, i32
  }
  func.func @transform_10(%arg0: i32) -> (i32, i32, i32) {
    %c0_i32 = arith.constant 0 : i32
    %c0_i32_0 = arith.constant 0 : i32
    %c0_i32_1 = arith.constant 0 : i32
    return %arg0, %c0_i32, %c0_i32_0 : i32, i32, i32
  }
  func.func @transform_11(%arg0: i32) -> (i32, i32, i32) {
    %c0_i32 = arith.constant 0 : i32
    %c0_i32_0 = arith.constant 0 : i32
    %c0_i32_1 = arith.constant 0 : i32
    return %arg0, %c0_i32, %c0_i32_0 : i32, i32, i32
  }
  func.func @transform_12(%arg0: i32) -> (i32, i32, i32) {
    %c0_i32 = arith.constant 0 : i32
    %c0_i32_0 = arith.constant 0 : i32
    %c0_i32_1 = arith.constant 0 : i32
    return %arg0, %c0_i32, %c0_i32_0 : i32, i32, i32
  }
  func.func @transform_13(%arg0: i32) -> (i32, i32, i32) {
    %c0_i32 = arith.constant 0 : i32
    %c0_i32_0 = arith.constant 0 : i32
    %c0_i32_1 = arith.constant 0 : i32
    return %arg0, %c0_i32, %c0_i32_0 : i32, i32, i32
  }
  func.func @transform_14(%arg0: i32) -> (i32, i32, i32) {
    %c0_i32 = arith.constant 0 : i32
    %c0_i32_0 = arith.constant 0 : i32
    %c0_i32_1 = arith.constant 0 : i32
    return %arg0, %c0_i32, %c0_i32_0 : i32, i32, i32
  }
  func.func @transform_15(%arg0: i32) -> (i32, i32, i32) {
    %c0_i32 = arith.constant 0 : i32
    %c0_i32_0 = arith.constant 0 : i32
    %c0_i32_1 = arith.constant 0 : i32
    return %arg0, %c0_i32, %c0_i32_0 : i32, i32, i32
  }
  func.func @transform_16(%arg0: i32) -> (i32, i32, i32) {
    %c0_i32 = arith.constant 0 : i32
    %c0_i32_0 = arith.constant 0 : i32
    %c0_i32_1 = arith.constant 0 : i32
    return %arg0, %c0_i32, %c0_i32_0 : i32, i32, i32
  }
  func.func @transform_17(%arg0: i32) -> (i32, i32, i32) {
    %c0_i32 = arith.constant 0 : i32
    %c0_i32_0 = arith.constant 0 : i32
    %c0_i32_1 = arith.constant 0 : i32
    return %arg0, %c0_i32, %c0_i32_0 : i32, i32, i32
  }
  func.func @transform_18(%arg0: i32) -> (i32, i32) {
    %c0_i32 = arith.constant 0 : i32
    %c0_i32_0 = arith.constant 0 : i32
    %c0_i32_1 = arith.constant 0 : i32
    return %c0_i32, %c0_i32_0 : i32, i32
  }
  func.func @transform_19(%arg0: i32) -> (i32, i32) {
    %c0_i32 = arith.constant 0 : i32
    %c0_i32_0 = arith.constant 0 : i32
    %c0_i32_1 = arith.constant 0 : i32
    return %c0_i32, %c0_i32_0 : i32, i32
  }
  func.func @transform_20(%arg0: i32) -> (i32, i32) {
    %c0_i32 = arith.constant 0 : i32
    %c0_i32_0 = arith.constant 0 : i32
    %c0_i32_1 = arith.constant 0 : i32
    return %c0_i32, %c0_i32_0 : i32, i32
  }
}

</mosaic_0001>

<bundles_post_ra>
// kernel: _lambda_.1
= control target key start
LH: loop header
LB: loop body
LE: loop exit
PB: predicated region body
PF: predicated region fallthrough
CT: control target
= control target key end

     0   :  { %s3616_s0 = inlined_call_operand.vmem [shape: f32[32,8], index: 0, kind: input, shape index: {}]   ;;  %s3617_s1 = inlined_call_operand.vmem [shape: f32[32,32], index: 1, kind: input, shape index: {}]   ;;  %s3618_s2 = inlined_call_operand.vmem [shape: f32[32,32], index: 2, kind: input, shape index: {}]   ;;  %s3619_s3 = inlined_call_operand.vmem [shape: f32[2,32], index: 3, kind: input, shape index: {}]   ;;  %s3620_s4 = inlined_call_operand.vmem [shape: f32[8,32], index: 4, kind: input, shape index: {}]   ;;  %s3621_s5 = inlined_call_operand.vmem [shape: f32[1,32], index: 5, kind: input, shape index: {}]   ;;  %s3622_s6 = inlined_call_operand.hbm [shape: f32[2,32,96], index: 6, kind: input, shape index: {}]   ;;  %s3623_s7 = inlined_call_operand.vmem [shape: f32[2,1,96], index: 7, kind: input, shape index: {}]   ;;  %s3624_s8 = inlined_call_operand.hbm [shape: f32[2,32,32], index: 8, kind: input, shape index: {}]   ;;  %s3625_s9 = inlined_call_operand.vmem [shape: f32[2,1,32], index: 9, kind: input, shape index: {}]   ;;  %s3626_s10 = inlined_call_operand.vmem [shape: f32[2,1,32], index: 10, kind: input, shape index: {}, may-alias: {10,16}]   ;;  %s3627_s11 = inlined_call_operand.vmem [shape: f32[2,1,32], index: 11, kind: input, shape index: {}, may-alias: {11,17}]   ;;  %s3628_s12 = inlined_call_operand.vmem [shape: f32[2,32,64], index: 12, kind: input, shape index: {}]   ;;  %s3629_s13 = inlined_call_operand.vmem [shape: f32[2,1,64], index: 13, kind: input, shape index: {}]   ;;  %s3630_s14 = inlined_call_operand.hbm [shape: f32[2,64,32], index: 14, kind: input, shape index: {}]   ;;  %s3631_s15 = inlined_call_operand.vmem [shape: f32[2,1,32], index: 15, kind: input, shape index: {}]   ;;  %s3632_s16 = inlined_call_operand.vmem [shape: f32[2,1,32], index: 16, kind: input, shape index: {}, may-alias: {10,16}]   ;;  %s3633_s17 = inlined_call_operand.vmem [shape: f32[2,1,32], index: 17, kind: input, shape index: {}, may-alias: {11,17}]   ;;  %s3634_s18 = inlined_call_operand.vmem [shape: f32[32,8], index: 18, kind: input, shape index: {}]   ;;  %s3635_s19 = inlined_call_operand.vmem [shape: f32[1,8], index: 19, kind: input, shape index: {}]   ;;  %s3636_s20 = inlined_call_operand.hbm [shape: f32[2,8], index: 20, kind: output, shape index: {}]  }
   0x1   :  { %3649 = sst [smem:[#allocation17_spill]] %s3616_s0 }
   0x2   :  { %3650 = sst [smem:[#allocation18_spill]] %s3617_s1 }
   0x3   :  { %3651 = sst [smem:[#allocation19_spill]] %s3618_s2 }
   0x4   :  { %3652 = sst [smem:[#allocation20_spill]] %s3619_s3 }
   0x5   :  { %3653 = sst [smem:[#allocation21_spill]] %s3620_s4 }
   0x6   :  { %3654 = sst [smem:[#allocation22_spill]] %s3621_s5 }
   0x7   :  { %3655 = sst [smem:[#allocation23_spill]] %s3622_s6 }
   0x8   :  { %3656 = sst [smem:[#allocation24_spill]] %s3624_s8 }
   0x9   :  { %3657 = sst [smem:[#allocation25_spill]] %s3630_s14 }
   0xa   :  { %3658 = sst [smem:[#allocation26_spill]] %s3632_s16 }
   0xb   :  { %3659 = sst [smem:[#allocation27_spill]] %s3633_s17 }
   0xc   :  { %3660 = sst [smem:[#allocation28_spill]] %s3634_s18 }
   0xd   :  { %3661 = sst [smem:[#allocation29_spill]] %s3635_s19 }
   0xe   :  { %3662 = sst [smem:[#allocation30_spill]] %s3636_s20 }
   0xf   :  { %25 = vsyncpa [#allocation4], 0 }
  0x10   :  { %27 = vsyncpa [#allocation4 + $0x1], 0 }
  0x11   :  { %28 = vsyncpa [#allocation7], 0 }
  0x12   :  { %30 = vsyncpa [#allocation7 + $0x1], 0 }
  0x13   :  { %31 = vsyncpa [#allocation5], 0  ;;  %s2925_s1 = smov 0   ;;  %s2927_s22 = smov 0  }
  0x14   :  { %s2929_s23 = smov 0   ;;  %s2931_s24 = smov 0  }
  0x15 LB: > { %3663 = sst [smem:[#allocation13_spill]] %s2792_s22  ;;  %s2944_s2 = sadd.s32 4294967295, %s2800_s24   ;;  %s2800_s24 = sphi %s2931_s24, %s3693_s24   ;;  %s2796_s23 = sphi %s2929_s23, %s3696_s23   ;;  %s2792_s22 = sphi %s2927_s22, %s3695_s22   ;;  %s2788_s1 = sphi %s2925_s1, %s3694_s1  }
  0x16   : > { %3664 = sst [smem:[#allocation14_spill]] %s2796_s23  ;;  %s2947_s25 = sadd.s32 1, %s2800_s24  }
  0x17   : > { %3665 = sst [smem:[#allocation15_spill]] %s2947_s25  ;;  %s167_s3 = ssub.s32 %s2800_s24, %s2947_s25 }
  0x18   : > { %s170_s26 = sadd.s32 1, %s2796_s23  ;;  %p168_p0 = scmp.eq.s32.totalorder %s167_s3, 0 }
  0x19   : > { %p177_p1 = scmp.ne.s32.totalorder %s2796_s23, %s2792_s22  ;;  %p178_p2 = scmp.eq.s32.totalorder %s2800_s24, 0 }
  0x1a   : > { %p183_p3 = scmp.ne.s32.totalorder %s2792_s22, %s2788_s1  ;;  %p184_p5 = scmp.eq.s32.totalorder %s2944_s2, 0 }
  0x1b   : > { %s2957_s27 = scalar_select %p168_p0, %s2796_s23, %s170_s26  }
  0x1c   : > { %p179_p4 = por %p178_p2, %p177_p1  ;;  %p2451_p6 = scmp.lt.s32.totalorder %s2800_s24, 2 }
  0x1d   : > { %3666 = sst [smem:[#allocation16_spill]] %s2957_s27  ;;  %p2961_p7 = por %p184_p5, %p183_p3 }
  0x1e   : > { %s2966_s4 = sand.u32 1, %s2796_s23   ;;  %s3645_s30 = sshll.u32 %s2800_s24, 5 }
  0x1f   : > { %s3644_s29 = sshll.u32 %s2966_s4, 5  ;;  %p2970_p8 = pnand %p2451_p6, %p179_p4 }
  0x20   : > { %s608_s21 = sand.u32 1, %s2800_s24   ;;  %s3669_s8 = sld [smem:[#allocation24_spill]] }
  0x21   : > { %s612_s23 = scalar_lea.vmem [#allocation6], %s3644_s29  ;;  %s2982_s20 = scalar_lea.sflag [#allocation7], %s608_s21 }
  0x22   : > { %s620_s25 = sshll.u32 %s612_s23, 4  ;;  %p2644_p10 = pneg %p2970_p8  ;;  %s621_s25 = int_to_ptr.vmem [resolvable:$true] %s620_s25 }
  0x26   : > { %s617_s26 = scalar_lea.hbm %s3669_s8, %s3645_s30 }
  0x27   : > { %s618_s27 = sshll.u32 %s617_s26, 4  ;;  %s2647_s26 = scalar_lea.hbm %s3669_s8, 64  ;;  %s619_s27 = int_to_ptr.hbm [resolvable:$true] %s618_s27 }
  0x28   : > { %s2640_s19 = sshra.s32 %s619_s27, 4  ;;  %s2641_s19 = int_to_ptr.hbm [resolvable:$true] %s2640_s19 }
  0x29   : > { %s2642_s18 = scalar_lea.hbm %s2641_s19, 32  ;;  %p2648_p13 = scmp.lt.s32.totalorder %s2641_s19, %s3669_s8 }
  0x2a   : > { %p2643_p9 = scmp.ne.s32.totalorder %s2641_s19, %s2642_s18  ;;  %p2649_p0 = scmp.lt.s32.totalorder %s2647_s26, %s2642_s18 }
  0x2c   : > { %p2645_p11 = pnand %p2644_p10, %p2643_p9  ;;  %p2650_p1 = por %p2649_p0, %p2648_p13 }
  0x2e   : > { %p2646_p12 = pneg %p2645_p11 }
  0x30   : > { %p2651_p2 = pnand %p2650_p1, %p2646_p12 }
  0x32   : > { %2654 = shalt.err (!%p2651_p2)
}
  0x33   : > { %s3646_s21 = smov 128   ;;  %s2803_s30 = smov 8  }
  0x34   : > { %2447 = dma.hbm_to_vmem [thread:$0]  (!%p2970_p8), %s619_s27, 512, %s621_s25, %s2982_s20, %s3646_s21, %s3646_s21, %s2803_s30  }
  0x35   : > { %p2342_p3 = scmp.ge.s32.totalorder %s2800_s24, 1  ;;  %p700_p4 = scmp.lt.s32.totalorder %s2800_s24, 3 }
  0x36   : > { %s3671_s19 = sshll.u32 %s2800_s24, 5  ;;  %s3672_s6 = sld [smem:[#allocation23_spill]] }
  0x37   : > { %p3003_p5 = pnand %p2342_p3, %p700_p4  ;;  %s3673_s23 = sshll.u32 %s2966_s4, 5 }
  0x38   : > { %s584_s8 = scalar_lea.vmem [#allocation3], %s3673_s23  ;;  %s581_s17 = scalar_lea.sflag [#allocation4], %s2966_s4 }
  0x39   : > { %s592_s5 = sshll.u32 %s584_s8, 4  ;;  %s593_s5 = int_to_ptr.vmem [resolvable:$true] %s592_s5 }
  0x3c   : > { %s589_s3 = scalar_lea.hbm %s3672_s6, %s3671_s19  ;;  %s2677_s29 = scalar_lea.hbm %s3672_s6, 64 }
  0x3d   : > { %s590_s26 = sshll.u32 %s589_s3, 4  ;;  %s591_s26 = int_to_ptr.hbm [resolvable:$true] %s590_s26 }
  0x3e   : > { %s2670_s16 = sshra.s32 %s591_s26, 4  ;;  %s2671_s16 = int_to_ptr.hbm [resolvable:$true] %s2670_s16 }
  0x3f   : > { %s2672_s25 = scalar_lea.hbm %s2671_s16, 32  ;;  %p2678_p12 = scmp.lt.s32.totalorder %s2671_s16, %s3672_s6 }
  0x40   : > { %p2673_p6 = scmp.ne.s32.totalorder %s2671_s16, %s2672_s25  ;;  %p2679_p13 = scmp.lt.s32.totalorder %s2677_s29, %s2672_s25 }
  0x42   : > { %p2675_p9 = pnand %p2673_p6, %p2644_p10  ;;  %p2680_p0 = por %p2679_p13, %p2678_p12 }
  0x44   : > { %p2676_p11 = pneg %p2675_p9 }
  0x46   : > { %p2681_p1 = pnand %p2680_p0, %p2676_p11 }
  0x48   : > { %2684 = shalt.err (!%p2681_p1)
}
  0x49   : > { %s3674_s8 = smov 128   ;;  %s2339_s3 = sshll.u32 %s2966_s4, 6 }
  0x4a   : > { %2444 = dma.hbm_to_vmem [thread:$0]  (!%p2970_p8), %s591_s26, 512, %s593_s5, %s581_s17, %s3674_s8, %s3674_s8, %s2803_s30  }
  0x4b   : > { %s2426_s21 = sshll.u32 %s2800_s24, 6  ;;  %s3675_s14 = sld [smem:[#allocation25_spill]] }
  0x4c   : > { %s666_s25 = scalar_lea.vmem [#allocation8], %s2339_s3 }
  0x4d   : > { %s674_s29 = sshll.u32 %s666_s25, 4  ;;  %s675_s29 = int_to_ptr.vmem [resolvable:$true] %s674_s29 }
  0x51   : > { %s671_s19 = scalar_lea.hbm %s3675_s14, %s2426_s21  ;;  %s2707_s24 = scalar_lea.hbm %s3675_s14, 128 }
  0x52   : > { %s672_s16 = sshll.u32 %s671_s19, 4  ;;  %s673_s16 = int_to_ptr.hbm [resolvable:$true] %s672_s16 }
  0x53   : > { %s2700_s1 = sshra.s32 %s673_s16, 4  ;;  %s2701_s1 = int_to_ptr.hbm [resolvable:$true] %s2700_s1 }
  0x54   : > { %s2702_s6 = scalar_lea.hbm %s2701_s1, 64  ;;  %p2708_p6 = scmp.lt.s32.totalorder %s2701_s1, %s3675_s14 }
  0x55   : > { %p2703_p2 = scmp.ne.s32.totalorder %s2701_s1, %s2702_s6  ;;  %p2709_p9 = scmp.lt.s32.totalorder %s2707_s24, %s2702_s6 }
  0x57   : > { %p2705_p3 = pnand %p2703_p2, %p2644_p10  ;;  %p2710_p11 = por %p2709_p9, %p2708_p6 }
  0x59   : > { %p2706_p4 = pneg %p2705_p3 }
  0x5b   : > { %p2711_p12 = pnand %p2710_p11, %p2706_p4 }
  0x5d   : > { %2714 = shalt.err (!%p2711_p12)
}
  0x5e   : > { %2450 = dma.hbm_to_vmem [thread:$0]  (!%p2970_p8), %s673_s16, 1024, %s675_s29, %s2982_s20, %s3674_s8, %s3674_s8, %s2803_s30  }
  0x5f   : > { %704 = sbr.rel (%p3003_p5) target bundleno = 2921 (0xb69), region = 100  ;;  %s706_s3 = sand.u32 (!%p3003_p5), 1, %s2792_s22  }
  0x60   : > { %s2343_s21 = sshll.u32 (!%p3003_p5), %s706_s3, 5  ;;  %s707_s23 = scalar_lea.sflag (!%p3003_p5), [#allocation4], %s706_s3 }
  0x61   : > { %s3052_s27 = scalar_lea.vmem (!%p3003_p5), [#allocation3], %s2343_s21 }
  0x64   : > { %2775 = dma.done.wait (%p2961_p7), %s707_s23, 512  }
  0x65   : > { %2777 = vsyncadd (%p2961_p7), %s707_s23, 4294966784  ;;  %s716_s6 = sand.u32 1, %s2944_s2   ;;  %s3059_s20 = scalar_lea.vmem [#allocation6], %s2343_s21 }
  0x66   : > { %s717_s0 = scalar_lea.sflag [#allocation7], %s716_s6 }
  0x67   : > { %2779 = dma.done.wait (%p2961_p7), %s717_s0, 1536  }
  0x68   : > { %2781 = vsyncadd (%p2961_p7), %s717_s0, 4294965760  ;;  %s2345_s30 = sshll.u32 %s706_s3, 6  ;;  %p822_p8 = scmp.lt.s32.totalorder %s2944_s2, 1 }
  0x69   : > { %s3676_s17 = sld [smem:[#allocation26_spill]]  ;;  %s3107_s22 = scalar_lea.vmem [#allocation8], %s2345_s30 }
  0x6a   : > { %s3067_s18 = scalar_select %p822_p8, %s2944_s2, 1 }
  0x6b   : > { %s3677_s26 = sld [smem:[#allocation27_spill]]  ;;  %p2348_p7 = scmp.ne.s32.totalorder %s2944_s2, 0 }
  0x6c   : > { %s2427_s3 = sshll.u32 %s3067_s18, 5  ;;  %s841_s6 = scalar_lea.vmem %s3629_s13, %s3067_s18 }
  0x6d   : > { %s3093_s19 = scalar_lea.vmem %s3628_s12, %s2427_s3  ;;  %s844_s29 = scalar_lea.vmem %s3631_s15, %s3067_s18 }
  0x6e   : > { %854 = sbr.rel (%p2348_p7) target bundleno = 256 (0x100), region = 116  ;;  %s3678_s23 = sld [smem:[#allocation21_spill]] (!%p2348_p7) }
  0x6f   : > { %s847_s28 = scalar_lea.vmem %s3676_s17, %s3067_s18  ;;  %s3679_s16 = sld [smem:[#allocation17_spill]] (!%p2348_p7) }
  0x70   : > { %s3680_s21 = sld [smem:[#allocation22_spill]] (!%p2348_p7) }
  0x71   : > { %s850_s14 = scalar_lea.vmem %s3677_s26, %s3067_s18  ;;  %s3681_s0 = sld [smem:[#allocation18_spill]] (!%p2348_p7) }
  0x73   : > { %vm864_vm0 = vcmask 64512   ;;  %vm914_vm1 = vcmask 261120  }
  0x74   : > { %v859_v0 = vld [vmem:[%s3678_s23] sm:$0xff] }
  0x75   : > { %v857_v1 = vld [vmem:[%s3679_s16 + $0x10] sm:$0xff]  ;;  %v858_v2 = vld [vmem:[%s3679_s16 + $0x18] sm:$0xff]  ;;  %2429 = vmatpush.msra.mxu2 %v859_v0  ;;  %2430 = vmatpush.msra.mxu3 %v859_v0  ;;  %v855_v3 = vld [vmem:[%s3679_s16] sm:$0xff] }
  0x76   : > { %v856_v4 = vld [vmem:[%s3679_s16 + $0x8] sm:$0xff]  ;;  %2351 = vmatmul.msk.f32.vlgmr.msra.gmra.mxu2 %vm864_vm0, %v857_v1  ;;  %2352 = vmatmul.msk.f32.vlgmr.msra.gmra.mxu3 %vm864_vm0, %v858_v2  ;;  %v2504_v5 = vld [vmem:[%s3680_s21] ss:$0 sm:$0xff] }
  0x77   : > { %892 = vmatpush.msra.mxu0 %v859_v0  ;;  %2428 = vmatpush.msra.mxu1 %v859_v0  ;;  %v906_v7 = vld [vmem:[%s3681_s0] sm:$0xff]  ;;  %v907_v9 = vld [vmem:[%s3681_s0 + $0x8] sm:$0xff]  ;;  %v908_v15 = vld [vmem:[%s3681_s0 + $0x10] sm:$0xff] }
  0x78   : > { %2349 = vmatmul.msk.f32.vlgmr.msra.gmra.mxu0 %vm864_vm0, %v855_v3  ;;  %2350 = vmatmul.msk.f32.vlgmr.msra.gmra.mxu1 %vm864_vm0, %v856_v4  ;;  %v909_v17 = vld [vmem:[%s3681_s0 + $0x18] sm:$0xff] }
  0xf5   : > { %v894_v6 = vpop.f32.mrf.mxu0  ;;  %v897_v8 = vpop.f32.mrf.mxu1 }
  0xf6   : > { %v895_v10 = vadd.f32 %v2504_v5, %v894_v6  ;;  %v898_v11 = vadd.f32 %v2504_v5, %v897_v8 }
  0xf8   : > { %v910_v12 = vadd.f32 %v906_v7, %v895_v10  ;;  %v911_v13 = vadd.f32 %v907_v9, %v898_v11 }
  0xf9   : > { %v900_v14 = vpop.f32.mrf.mxu2  ;;  %v903_v16 = vpop.f32.mrf.mxu3 }
  0xfa   : > { %915 = vst.msk [vmem:[#allocation2] sm:$0xff] %vm914_vm1, %v910_v12  ;;  %v901_v18 = vadd.f32 %v2504_v5, %v900_v14  ;;  %v904_v19 = vadd.f32 %v2504_v5, %v903_v16 }
  0xfb   : > { %916 = vst.msk [vmem:[#allocation2 + $0x8] sm:$0xff] %vm914_vm1, %v911_v13 }
  0xfc   : > { %v912_v20 = vadd.f32 %v908_v15, %v901_v18  ;;  %v913_v21 = vadd.f32 %v909_v17, %v904_v19 }
  0xfe   : > { %917 = vst.msk [vmem:[#allocation2 + $0x10] sm:$0xff] %vm914_vm1, %v912_v20 }
  0xff   : > { %918 = vst.msk [vmem:[#allocation2 + $0x18] sm:$0xff] %vm914_vm1, %v913_v21 }
 0x100 PF: > { %v930_v22 = vld [vmem:[%s3052_s27 + $0x18] sm:$0xff]  ;;  %v929_v23 = vld [vmem:[%s3052_s27 + $0x10] sm:$0xff]  ;;  %v928_v24 = vld [vmem:[%s3052_s27 + $0x8] sm:$0xff]  ;;  %vm935_vm2 = vcmask 261120   ;;  %s2804_s4 = smov 96   ;;  %s2805_s21 = smov 64  }
 0x101   : > { %960 = vmatpush.msra.mxu0 %v930_v22  ;;  %v927_v25 = vld [vmem:[%s3052_s27] sm:$0xff]  ;;  %s3682_s27 = scalar_lea.vmem %s3623_s7, %s3067_s18  ;;  %s2806_s3 = smov 120   ;;  %vm989_vm3 = vcmask 64512   ;;  %vm1690_vm4 = vcmask 130048   ;;  %vm1695_vm5 = vcmask 195584  }
 0x102   : > { %v919_v26 = vld [vmem:[#allocation2] sm:$0xff]  ;;  %v920_v27 = vld [vmem:[#allocation2 + $0x8] sm:$0xff]  ;;  %s2807_s23 = smov 80   ;;  %s2808_s8 = smov 72  }
 0x103   : > { %961 = vmatpush.msra.mxu0 %v929_v23  ;;  %v2545_v31 = vld [vmem:[%s3682_s27] ss:$0 sm:$0xff]  ;;  %s2809_s25 = smov 88   ;;  %s3683_s26 = sld [smem:[#allocation19_spill]] }
 0x104   : > { %s2814_s17 = smov 40   ;;  %s2815_s30 = smov 8  }
 0x105   : > { %962 = vmatpush.msra.mxu0 %v928_v24  ;;  %v921_v28 = vld [vmem:[#allocation2 + $0x10] sm:$0xff]  ;;  %s2816_s1 = smov 16   ;;  %s2817_s5 = smov 24  }
 0x106   : > { %v922_v29 = vld [vmem:[#allocation2 + $0x18] sm:$0xff]  ;;  %s3684_s27 = scalar_lea.vmem %s3625_s9, %s3067_s18  ;;  %p2417_p10 = scmp.ne.s32.totalorder %s2944_s2, 1 }
 0x107   : > { %963 = vmatpush.msra.mxu0 %v927_v25 }
 0x108   : > { %2353 = vmatmul.msk.f32.vlgmr.msra.gmra.mxu0 %vm935_vm2, %v919_v26 }
 0x109   : > { %v3224_v2 = vld [vmem:[%s3683_s26] sm:$0xff]  ;;  %v3231_v7 = vld [vmem:[%s3683_s26 + $0x8] sm:$0xff]  ;;  %v3238_v12 = vld [vmem:[%s3683_s26 + $0x10] sm:$0xff] }
 0x10a   : > { %v3245_v17 = vld [vmem:[%s3683_s26 + $0x18] sm:$0xff] }
 0x110   : > { %2354 = vmatmul.msk.f32.gmra.mxu0 %vm935_vm2, %v920_v27 }
 0x118   : > { %2355 = vmatmul.msk.f32.gmra.mxu0 %vm935_vm2, %v921_v28 }
 0x120   : > { %2356 = vmatmul.msk.f32.gmra.mxu0 %vm935_vm2, %v922_v29 }
 0x185   : > { %v965_v30 = vpop.f32.mrf.mxu0 }
 0x186   : > { %v3153_v33 = vadd.f32 %v2545_v31, %v965_v30 }
 0x18d   : > { %v968_v32 = vpop.f32.mrf.mxu0 }
 0x18e   : > { %v3155_v34 = vadd.f32 %v2545_v31, %v968_v32 }
 0x190   : > { %983 = vrot.lane.b32.xlu1 %v3155_v34, %s2804_s4  ;;  %v3160_v35 = vpack.i.bf16 %v3153_v33, %v3155_v34 }
 0x192   : > { %2506 = vrot.lane.b32.xlu2 %v3160_v35, %s2805_s21 }
 0x195   : > { %v971_v36 = vpop.f32.mrf.mxu0 }
 0x196   : > { %v3165_v38 = vadd.f32 %v2545_v31, %v971_v36 }
 0x198   : > { %981 = vrot.lane.b32.xlu1 %v3153_v33, %s2804_s4 }
 0x19a   : > { %1142 = vrot.lane.b32.xlu2 %v3155_v34, %s2806_s3 }
 0x19d   : > { %v974_v37 = vpop.f32.mrf.mxu0 }
 0x19e   : > { %v3167_v39 = vadd.f32 %v2545_v31, %v974_v37 }
 0x1a0   : > { %987 = vrot.lane.b32.xlu0 %v3167_v39, %s2804_s4  ;;  %1144 = vrot.lane.b32.xlu1 %v3165_v38, %s2806_s3  ;;  %v3182_v40 = vpack.i.bf16 %v3165_v38, %v3167_v39 }
 0x1a2   : > { %1318 = vrot.lane.b32.xlu2 %v3165_v38, %s2807_s23 }
 0x1a8   : > { %985 = vrot.lane.b32.xlu0 %v3165_v38, %s2804_s4  ;;  %1484 = vrot.lane.b32.xlu1 %v3165_v38, %s2808_s8 }
 0x1aa   : > { %1154 = vrot.lane.b32.xlu2 %v3167_v39, %s2809_s25 }
 0x1b0   : > { %1152 = vrot.lane.b32.xlu0 %v3165_v38, %s2809_s25  ;;  %1316 = vrot.lane.b32.xlu1 %v3155_v34, %s2807_s23 }
 0x1b8   : > { %1150 = vrot.lane.b32.xlu0 %v3155_v34, %s2809_s25  ;;  %2511 = vrot.lane.b32.xlu1 %v3182_v40, %s2805_s21  ;;  %s3685_s21 = scalar_lea.vmem %s3626_s10, %s3067_s18 }
 0x1c0   : > { %1148 = vrot.lane.b32.xlu0 %v3153_v33, %s2809_s25  ;;  %1486 = vrot.lane.b32.xlu1 %v3167_v39, %s2808_s8  ;;  %s2813_s25 = smov 48  }
 0x1c8   : > { %1140 = vrot.lane.b32.xlu0 %v3153_v33, %s2806_s3 }
 0x1d0   : > { %1482 = vrot.lane.b32.xlu0 %v3155_v34, %s2808_s8 }
 0x1d8   : > { %1320 = vrot.lane.b32.xlu0 %v3167_v39, %s2807_s23 }
 0x1e0   : > { %1146 = vrot.lane.b32.xlu0 %v3167_v39, %s2806_s3  ;;  %s2810_s3 = smov 112  }
 0x1ec   : > { %v2507_v41 = vpop.permute.xlu2 %2506 }
 0x1ed   : > { %v2508_v57 = vunpack.i.l.bf16 %v2507_v41  ;;  %v2509_v58 = vunpack.i.h.bf16 %v2507_v41 }
 0x1f4   : > { %v1143_v42 = vpop.permute.xlu2 %1142 }
 0x1fc   : > { %v1319_v43 = vpop.permute.xlu2 %1318 }
 0x202   : > { %v984_v44 = vpop.permute.xlu1 %983 }
 0x204   : > { %v1155_v45 = vpop.permute.xlu2 %1154 }
 0x205   : > { %2369 = vmatpush.xpose.msk.msra.mxu3 %vm989_vm3, %v1155_v45 }
 0x20a   : > { %v982_v46 = vpop.permute.xlu1 %981 }
 0x212   : > { %v988_v47 = vpop.permute.xlu0 %987  ;;  %v1145_v48 = vpop.permute.xlu1 %1144 }
 0x213   : > { %2357 = vmatpush.xpose.msk.msra.mxu1 %vm989_vm3, %v988_v47 }
 0x21a   : > { %v986_v49 = vpop.permute.xlu0 %985  ;;  %v1485_v50 = vpop.permute.xlu1 %1484 }
 0x21b   : > { %2358 = vmatpush.xpose.msk.msra.mxu1 %vm989_vm3, %v986_v49 }
 0x21f   : > { %2359 = vmatpush.xpose.msk.msra.mxu1 %vm989_vm3, %v984_v44 }
 0x222   : > { %v1153_v51 = vpop.permute.xlu0 %1152  ;;  %v1317_v52 = vpop.permute.xlu1 %1316 }
 0x223   : > { %2360 = vmatpush.xpose.msk.msra.mxu1 %vm989_vm3, %v982_v46  ;;  %2370 = vmatpush.xpose.msk.msra.mxu3 %vm989_vm3, %v1153_v51 }
 0x226   : > { %2361 = vmatmul.msk.f32.vlgmr.msra.gmra.mxu1 %vm989_vm3, %v3153_v33 }
 0x22a   : > { %v1151_v53 = vpop.permute.xlu0 %1150  ;;  %v2512_v54 = vpop.permute.xlu1 %2511 }
 0x22b   : > { %2371 = vmatpush.xpose.msk.msra.mxu3 %vm989_vm3, %v1151_v53  ;;  %v2513_v55 = vunpack.i.l.bf16 %v2512_v54  ;;  %v2514_v56 = vunpack.i.h.bf16 %v2512_v54 }
 0x22d   : > { %1123 = vmatpush.msra.mxu2 %v2513_v55 }
 0x22e   : > { %2362 = vmatmul.msk.f32.gmra.mxu1 %vm989_vm3, %v3155_v34 }
 0x22f   : > { %1124 = vmatpush.msra.mxu2 %v2514_v56 }
 0x231   : > { %1125 = vmatpush.msra.mxu2 %v2508_v57 }
 0x232   : > { %v1149_v59 = vpop.permute.xlu0 %1148  ;;  %v1487_v60 = vpop.permute.xlu1 %1486 }
 0x233   : > { %1126 = vmatpush.msra.mxu2 %v2509_v58  ;;  %2372 = vmatpush.xpose.msk.msra.mxu3 %vm989_vm3, %v1149_v59 }
 0x236   : > { %2363 = vmatmul.msk.f32.gmra.mxu1 %vm989_vm3, %v3165_v38 }
 0x237   : > { %2393 = vmatpush.xpose.msk.msrb.mxu3 %vm989_vm3, %v1487_v60 }
 0x23a   : > { %v1141_v61 = vpop.permute.xlu0 %1140 }
 0x23b   : > { %2394 = vmatpush.xpose.msk.msrb.mxu3 %vm989_vm3, %v1485_v50 }
 0x23c   : > { %2373 = vmatmul.msk.f32.vlgmr.msra.gmra.mxu3 %vm989_vm3, %v1141_v61 }
 0x23e   : > { %2364 = vmatmul.msk.f32.gmra.mxu1 %vm989_vm3, %v3167_v39 }
 0x242   : > { %v1483_v62 = vpop.permute.xlu0 %1482 }
 0x243   : > { %2395 = vmatpush.xpose.msk.msrb.mxu3 %vm989_vm3, %v1483_v62 }
 0x244   : > { %2374 = vmatmul.msk.f32.gmra.mxu3 %vm989_vm3, %v1143_v42 }
 0x24a   : > { %v1321_v63 = vpop.permute.xlu0 %1320 }
 0x24b   : > { %2381 = vmatpush.xpose.msk.msrb.mxu2 %vm989_vm3, %v1321_v63 }
 0x24c   : > { %2375 = vmatmul.msk.f32.gmra.mxu3 %vm989_vm3, %v1145_v48 }
 0x24f   : > { %2382 = vmatpush.xpose.msk.msrb.mxu2 %vm989_vm3, %v1319_v43 }
 0x252   : > { %v1147_v0 = vpop.permute.xlu0 %1146 }
 0x253   : > { %2383 = vmatpush.xpose.msk.msrb.mxu2 %vm989_vm3, %v1317_v52 }
 0x254   : > { %2376 = vmatmul.msk.f32.gmra.mxu3 %vm989_vm3, %v1147_v0 }
 0x2a3   : > { %v1023_v1 = vpop.f32.mrf.mxu1 }
 0x2a4   : > { %v1035_v3 = vmul.f32 0.35355338, %v1023_v1 }
 0x2a6   : > { %v1039_v4 = vadd.f32 %v1035_v3, %v3224_v2 }
 0x2a8   : > { %v1043_v5 = vsel %vm935_vm2, %v1039_v4, -inf }
 0x2a9   : > { %1044 = vmax.xlane.f32.xlu2 %v1043_v5 }
 0x2ab   : > { %v1026_v6 = vpop.f32.mrf.mxu1 }
 0x2ac   : > { %v1036_v8 = vmul.f32 0.35355338, %v1026_v6 }
 0x2ae   : > { %v1040_v9 = vadd.f32 %v1036_v8, %v3231_v7 }
 0x2b0   : > { %v1046_v10 = vsel %vm935_vm2, %v1040_v9, -inf }
 0x2b1   : > { %1047 = vmax.xlane.f32.xlu2 %v1046_v10 }
 0x2b3   : > { %v1029_v11 = vpop.f32.mrf.mxu1 }
 0x2b4   : > { %v1037_v13 = vmul.f32 0.35355338, %v1029_v11 }
 0x2b6   : > { %v1041_v14 = vadd.f32 %v1037_v13, %v3238_v12 }
 0x2b8   : > { %v1049_v15 = vsel %vm935_vm2, %v1041_v14, -inf }
 0x2b9   : > { %1050 = vmax.xlane.f32.xlu0 %v1049_v15 }
 0x2bb   : > { %v1032_v16 = vpop.f32.mrf.mxu1 }
 0x2bc   : > { %v1038_v18 = vmul.f32 0.35355338, %v1032_v16 }
 0x2be   : > { %v1042_v19 = vadd.f32 %v1038_v18, %v3245_v17 }
 0x2bf   : > { %v1189_v47 = vpop.f32.mrf.mxu3 }
 0x2c0   : > { %v1052_v20 = vsel %vm935_vm2, %v1042_v19, -inf  ;;  %v1201_v56 = vmul.f32 0.35355338, %v1189_v47 }
 0x2c1   : > { %1053 = vmax.xlane.f32.xlu1 %v1052_v20 }
 0x2c2   : > { %v1205_v61 = vadd.f32 %v1201_v56, %v3224_v2 }
 0x2c7   : > { %v1192_v49 = vpop.f32.mrf.mxu3 }
 0x2c9   : > { %1480 = vrot.lane.b32.xlu2 %v3153_v33, %s2808_s8  ;;  %s2812_s8 = smov 56  }
 0x2cd   : > { %1306 = vrot.lane.b32.xlu0 %v3153_v33, %s2810_s3 }
 0x2cf   : > { %v1195_v50 = vpop.f32.mrf.mxu3 }
 0x2d0   : > { %v1203_v52 = vmul.f32 0.35355338, %v1195_v50 }
 0x2d7   : > { %v1198_v62 = vpop.f32.mrf.mxu3 }
 0x2d8   : > { %v1204_v63 = vmul.f32 0.35355338, %v1198_v62 }
 0x2da   : > { %1314 = vrot.lane.b32.xlu1 %v3153_v33, %s2807_s23  ;;  %s2811_s23 = smov 104  }
 0x31c   : > { %v1045_v21 = vpop.xlane.xlu2 %1044 }
 0x31d   : > { %v1055_v22 = vsub.f32 %v1039_v4, %v1045_v21  ;;  %v3286_v4 = vadd.f32 %v1204_v63, %v3245_v17 }
 0x31f   : > { %v1059_v23 = vmul.f32 1.442695, %v1055_v22  ;;  %v1218_v5 = vsel %vm935_vm2, %v3286_v4, -inf }
 0x321   : > { %2553 = vpow2.f32 %v1059_v23 }
 0x324   : > { %v1048_v24 = vpop.xlane.xlu2 %1047 }
 0x325   : > { %v1056_v25 = vsub.f32 %v1040_v9, %v1048_v24 }
 0x327   : > { %v2554_v26 = vpop.eup %2553  ;;  %v1061_v27 = vmul.f32 1.442695, %v1056_v25 }
 0x328   : > { %v1067_v28 = vsel %vm935_vm2, %v2554_v26, 0.0 }
 0x329   : > { %2555 = vpow2.f32 %v1061_v27  ;;  %1068 = vadd.xlane.f32.xlu2 %v1067_v28 }
 0x32c   : > { %v1481_v29 = vpop.permute.xlu2 %1480  ;;  %v1051_v30 = vpop.xlane.xlu0 %1050 }
 0x32d   : > { %v1057_v31 = vsub.f32 %v1041_v14, %v1051_v30  ;;  %2396 = vmatpush.xpose.msk.msrb.mxu3 %vm989_vm3, %v1481_v29 }
 0x32f   : > { %v2556_v32 = vpop.eup %2555  ;;  %v1063_v36 = vmul.f32 1.442695, %v1057_v31 }
 0x330   : > { %v1070_v37 = vsel %vm935_vm2, %v2556_v32, 0.0 }
 0x331   : > { %2557 = vpow2.f32 %v1063_v36  ;;  %1071 = vadd.xlane.f32.xlu1 %v1070_v37 }
 0x334   : > { %v1054_v43 = vpop.xlane.xlu1 %1053 }
 0x335   : > { %v1058_v45 = vsub.f32 %v1042_v19, %v1054_v43 }
 0x337   : > { %v2558_v41 = vpop.eup %2557  ;;  %v1065_v46 = vmul.f32 1.442695, %v1058_v45 }
 0x338   : > { %v1073_v42 = vsel %vm935_vm2, %v2558_v41, 0.0 }
 0x339   : > { %1074 = vadd.xlane.f32.xlu0 %v1073_v42  ;;  %2559 = vpow2.f32 %v1065_v46 }
 0x33f   : > { %v2560_v48 = vpop.eup %2559  ;;  %v1307_v58 = vpop.permute.xlu0 %1306 }
 0x341   : > { %1308 = vrot.lane.b32.xlu2 %v3155_v34, %s2810_s3 }
 0x34a   : > { %1472 = vrot.lane.b32.xlu1 %v3153_v33, %s2811_s23  ;;  %v1076_v33 = vsel %vm935_vm2, %v2560_v48, 0.0 }
 0x34c   : > { %v1315_v44 = vpop.permute.xlu1 %1314 }
 0x34d   : > { %1474 = vrot.lane.b32.xlu0 %v3155_v34, %s2811_s23  ;;  %2384 = vmatpush.xpose.msk.msrb.mxu2 %vm989_vm3, %v1315_v44  ;;  %v1202_v34 = vmul.f32 0.35355338, %v1192_v49 }
 0x34f   : > { %v3271_v51 = vadd.f32 %v1202_v34, %v3231_v7 }
 0x351   : > { %v1212_v53 = vsel %vm935_vm2, %v3271_v51, -inf }
 0x352   : > { %1310 = vrot.lane.b32.xlu1 %v3165_v38, %s2810_s3 }
 0x355   : > { %1312 = vrot.lane.b32.xlu0 %v3167_v39, %s2810_s3 }
 0x35a   : > { %1478 = vrot.lane.b32.xlu1 %v3167_v39, %s2811_s23  ;;  %v3276_v39 = vadd.f32 %v1203_v52, %v3238_v12 }
 0x35c   : > { %v1215_v54 = vsel %vm935_vm2, %v3276_v39, -inf }
 0x36a   : > { %1077 = vadd.xlane.f32.xlu2 %v1076_v33 }
 0x37f   : > { %1213 = vmax.xlane.f32.xlu0 %v1212_v53 }
 0x382   : > { %1476 = vrot.lane.b32.xlu2 %v3165_v38, %s2811_s23  ;;  %v1209_v38 = vsel %vm935_vm2, %v1205_v61, -inf }
 0x384   : > { %1216 = vmax.xlane.f32.xlu1 %v1215_v54 }
 0x39c   : > { %v1069_v55 = vpop.xlane.xlu2 %1068 }
 0x39d   : > { %2561 = vrcp.f32 %v1069_v55 }
 0x3a3   : > { %v2562_v57 = vpop.eup %2561 }
 0x3a4   : > { %v1072_v59 = vpop.xlane.xlu1 %1071  ;;  %v1083_v60 = vmul.f32 %v2562_v57, %v2554_v26  ;;  %v1309_v11 = vpop.permute.xlu2 %1308 }
 0x3a5   : > { %2563 = vrcp.f32 %v1072_v59 }
 0x3a6   : > { %2365 = vmatmul.msk.f32.vlgmr.msra.gmra.mxu2 %vm935_vm2, %v1083_v60 }
 0x3ab   : > { %v2564_v0 = vpop.eup %2563  ;;  %1210 = vmax.xlane.f32.xlu2 %v1209_v38 }
 0x3ac   : > { %v1075_v1 = vpop.xlane.xlu0 %1074  ;;  %v1084_v3 = vmul.f32 %v2564_v0, %v2556_v32 }
 0x3ad   : > { %2565 = vrcp.f32 %v1075_v1 }
 0x3ae   : > { %2366 = vmatmul.msk.f32.gmra.mxu2 %vm935_vm2, %v1084_v3 }
 0x3b3   : > { %v2566_v6 = vpop.eup %2565  ;;  %1219 = vmax.xlane.f32.xlu2 %v1218_v5 }
 0x3b4   : > { %v1085_v8 = vmul.f32 %v2566_v6, %v2558_v41 }
 0x3b6   : > { %2367 = vmatmul.msk.f32.gmra.mxu2 %vm935_vm2, %v1085_v8 }
 0x3bc   : > { %v1473_v9 = vpop.permute.xlu1 %1472 }
 0x3bd   : > { %2397 = vmatmul.msk.f32.vlgmr.msrb.gmra.mxu3 %vm989_vm3, %v1473_v9 }
 0x3bf   : > { %v1475_v10 = vpop.permute.xlu0 %1474 }
 0x3c4   : > { %v1311_v14 = vpop.permute.xlu1 %1310 }
 0x3c5   : > { %2398 = vmatmul.msk.f32.gmra.mxu3 %vm989_vm3, %v1475_v10 }
 0x3c7   : > { %v1313_v20 = vpop.permute.xlu0 %1312 }
 0x3cc   : > { %v1479_v19 = vpop.permute.xlu1 %1478 }
 0x3dd   : > { %v1078_v13 = vpop.xlane.xlu2 %1077 }
 0x3de   : > { %2567 = vrcp.f32 %v1078_v13 }
 0x3e4   : > { %v2568_v15 = vpop.eup %2567 }
 0x3e5   : > { %v1477_v16 = vpop.permute.xlu2 %1476  ;;  %v1086_v18 = vmul.f32 %v2568_v15, %v2560_v48 }
 0x3e6   : > { %2399 = vmatmul.msk.f32.gmra.mxu3 %vm989_vm3, %v1477_v16 }
 0x3e7   : > { %2368 = vmatmul.msk.f32.gmra.mxu2 %vm935_vm2, %v1086_v18 }
 0x3ee   : > { %2400 = vmatmul.msk.f32.gmra.mxu3 %vm989_vm3, %v1479_v19 }
 0x3ef   : > { %2385 = vmatmul.msk.f32.vlgmr.msrb.gmra.mxu2 %vm989_vm3, %v1307_v58 }
 0x3f2   : > { %v1214_v33 = vpop.xlane.xlu0 %1213 }
 0x3f3   : > { %v1222_v52 = vsub.f32 %v3271_v51, %v1214_v33 }
 0x3f5   : > { %v1227_v55 = vmul.f32 1.442695, %v1222_v52 }
 0x3f7   : > { %2386 = vmatmul.msk.f32.gmra.mxu2 %vm989_vm3, %v1309_v11  ;;  %v1217_v57 = vpop.xlane.xlu1 %1216 }
 0x3ff   : > { %2387 = vmatmul.msk.f32.gmra.mxu2 %vm989_vm3, %v1311_v14 }
 0x407   : > { %2388 = vmatmul.msk.f32.gmra.mxu2 %vm989_vm3, %v1313_v20 }
 0x41e   : > { %v1211_v22 = vpop.xlane.xlu2 %1210 }
 0x41f   : > { %v1221_v25 = vsub.f32 %v1205_v61, %v1211_v22  ;;  %v1223_v61 = vsub.f32 %v3276_v39, %v1217_v57 }
 0x421   : > { %v1225_v27 = vmul.f32 1.442695, %v1221_v25  ;;  %v1229_v62 = vmul.f32 1.442695, %v1223_v61 }
 0x423   : > { %2569 = vpow2.f32 %v1225_v27 }
 0x424   : > { %2571 = vpow2.f32 %v1227_v55 }
 0x425   : > { %2573 = vpow2.f32 %v1229_v62 }
 0x429   : > { %v3310_v32 = vpop.f32.mrf.mxu2  ;;  %v3312_v36 = vpop.eup %2569 }
 0x42a   : > { %v1233_v37 = vsel %vm935_vm2, %v3312_v36, 0.0  ;;  %v3338_v0 = vpop.eup %2571 }
 0x42b   : > { %v3344_v6 = vpop.eup %2573 }
 0x42c   : > { %v1239_v9 = vsel %vm935_vm2, %v3344_v6, 0.0 }
 0x431   : > { %v3316_v41 = vpop.f32.mrf.mxu2 }
 0x439   : > { %v3318_v42 = vpop.f32.mrf.mxu2 }
 0x440   : > { %v1521_v21 = vpop.f32.mrf.mxu3 }
 0x441   : > { %v1533_v23 = vmul.f32 0.35355338, %v1521_v21 }
 0x443   : > { %v3301_v24 = vadd.f32 %v1533_v23, %v3224_v2 }
 0x445   : > { %v1541_v26 = vsel %vm935_vm2, %v3301_v24, -inf }
 0x446   : > { %1542 = vmax.xlane.f32.xlu1 %v1541_v26 }
 0x448   : > { %v1524_v28 = vpop.f32.mrf.mxu3 }
 0x449   : > { %v1534_v29 = vmul.f32 0.35355338, %v1524_v28 }
 0x44b   : > { %v3306_v30 = vadd.f32 %v1534_v29, %v3231_v7 }
 0x44d   : > { %v1544_v31 = vsel %vm935_vm2, %v3306_v30, -inf }
 0x44e   : > { %1545 = vmax.xlane.f32.xlu0 %v1544_v31 }
 0x456   : > { %1234 = vadd.xlane.f32.xlu0 %v1233_v37 }
 0x469   : > { %v1527_v43 = vpop.f32.mrf.mxu3 }
 0x46a   : > { %v1535_v44 = vmul.f32 0.35355338, %v1527_v43  ;;  %v3320_v45 = vpop.f32.mrf.mxu2 }
 0x46c   : > { %v3323_v46 = vadd.f32 %v1535_v44, %v3238_v12 }
 0x46e   : > { %v1547_v47 = vsel %vm935_vm2, %v3323_v46, -inf }
 0x46f   : > { %1548 = vmax.xlane.f32.xlu2 %v1547_v47 }
 0x471   : > { %v1530_v34 = vpop.f32.mrf.mxu3 }
 0x472   : > { %v1355_v48 = vpop.f32.mrf.mxu2  ;;  %v1536_v53 = vmul.f32 0.35355338, %v1530_v34 }
 0x473   : > { %v1367_v49 = vmul.f32 0.35355338, %v1355_v48 }
 0x474   : > { %v3331_v59 = vadd.f32 %v1536_v53, %v3245_v17 }
 0x475   : > { %v1371_v50 = vadd.f32 %v1367_v49, %v3224_v2 }
 0x476   : > { %v1550_v2 = vsel %vm935_vm2, %v3331_v59, -inf }
 0x477   : > { %v1375_v54 = vsel %vm935_vm2, %v1371_v50, -inf }
 0x478   : > { %1376 = vmax.xlane.f32.xlu0 %v1375_v54 }
 0x47a   : > { %v1358_v56 = vpop.f32.mrf.mxu2 }
 0x47b   : > { %v1368_v58 = vmul.f32 0.35355338, %v1358_v56 }
 0x47d   : > { %v1372_v60 = vadd.f32 %v1368_v58, %v3231_v7  ;;  %v1236_v7 = vsel %vm935_vm2, %v3338_v0, 0.0 }
 0x47f   : > { %v1378_v51 = vsel %vm935_vm2, %v1372_v60, -inf }
 0x480   : > { %1551 = vmax.xlane.f32.xlu0 %v1550_v2  ;;  %1379 = vmax.xlane.f32.xlu2 %v1378_v51 }
 0x482   : > { %v1361_v63 = vpop.f32.mrf.mxu2 }
 0x483   : > { %v1369_v38 = vmul.f32 0.35355338, %v1361_v63 }
 0x485   : > { %v1373_v1 = vadd.f32 %v1369_v38, %v3238_v12  ;;  %v1220_v12 = vpop.xlane.xlu2 %1219 }
 0x487   : > { %v1381_v39 = vsel %vm935_vm2, %v1373_v1, -inf }
 0x488   : > { %1237 = vadd.xlane.f32.xlu0 %v1236_v7  ;;  %1382 = vmax.xlane.f32.xlu1 %v1381_v39 }
 0x48a   : > { %v1364_v3 = vpop.f32.mrf.mxu2 }
 0x48b   : > { %v1370_v5 = vmul.f32 0.35355338, %v1364_v3 }
 0x48d   : > { %v1374_v8 = vadd.f32 %v1370_v5, %v3245_v17  ;;  %v1224_v17 = vsub.f32 %v3286_v4, %v1220_v12 }
 0x48f   : > { %v1384_v10 = vsel %vm935_vm2, %v1374_v8, -inf  ;;  %v1231_v13 = vmul.f32 1.442695, %v1224_v17 }
 0x490   : > { %1240 = vadd.xlane.f32.xlu0 %v1239_v9  ;;  %1385 = vmax.xlane.f32.xlu2 %v1384_v10 }
 0x491   : > { %2575 = vpow2.f32 %v1231_v13 }
 0x497   : > { %v3358_v16 = vpop.eup %2575 }
 0x498   : > { %v1242_v18 = vsel %vm935_vm2, %v3358_v16, 0.0 }
 0x4a1   : > { %2516 = vrot.lane.b32.xlu1 %v3182_v40, %s2812_s8 }
 0x4a4   : > { %2526 = vrot.lane.b32.xlu0 %v3182_v40, %s2813_s25 }
 0x4a8   : > { %2521 = vrot.lane.b32.xlu2 %v3160_v35, %s2812_s8  ;;  %s3686_s8 = scalar_lea.vmem %s3627_s11, %s3067_s18 }
 0x4ac   : > { %2531 = vrot.lane.b32.xlu0 %v3182_v40, %s2814_s17 }
 0x4b4   : > { %2536 = vrot.lane.b32.xlu0 %v3160_v35, %s2813_s25 }
 0x4b9   : > { %v1543_v11 = vpop.xlane.xlu1 %1542 }
 0x4ba   : > { %v1553_v14 = vsub.f32 %v3301_v24, %v1543_v11 }
 0x4bc   : > { %v1557_v15 = vmul.f32 1.442695, %v1553_v14 }
 0x4be   : > { %2577 = vpow2.f32 %v1557_v15 }
 0x4c1   : > { %v1546_v4 = vpop.xlane.xlu0 %1545 }
 0x4c2   : > { %v1554_v29 = vsub.f32 %v3306_v30, %v1546_v4 }
 0x4c4   : > { %v3362_v19 = vpop.eup %2577  ;;  %v1559_v43 = vmul.f32 1.442695, %v1554_v29 }
 0x4c5   : > { %v1565_v40 = vsel %vm935_vm2, %v3362_v19, 0.0 }
 0x4c9   : > { %v1235_v20 = vpop.xlane.xlu0 %1234 }
 0x4cb   : > { %1243 = vadd.xlane.f32.xlu1 %v1242_v18 }
 0x4d1   : > { %1566 = vadd.xlane.f32.xlu2 %v1565_v40 }
 0x4e2   : > { %v3366_v21 = vpop.xlane.xlu2 %1548 }
 0x4e3   : > { %v1555_v14 = vsub.f32 %v3323_v46, %v3366_v21 }
 0x4e5   : > { %v1561_v40 = vmul.f32 1.442695, %v1555_v14 }
 0x4eb   : > { %v1377_v22 = vpop.xlane.xlu0 %1376 }
 0x4ec   : > { %v1387_v23 = vsub.f32 %v1371_v50, %v1377_v22 }
 0x4ee   : > { %v1391_v24 = vmul.f32 1.442695, %v1387_v23 }
 0x4f0   : > { %2579 = vpow2.f32 %v1391_v24 }
 0x4f3   : > { %v1380_v25 = vpop.xlane.xlu2 %1379  ;;  %v1552_v37 = vpop.xlane.xlu0 %1551 }
 0x4f4   : > { %v1388_v26 = vsub.f32 %v1372_v60, %v1380_v25  ;;  %v1556_v48 = vsub.f32 %v3331_v59, %v1552_v37 }
 0x4f6   : > { %v3368_v27 = vpop.eup %2579  ;;  %v1393_v28 = vmul.f32 1.442695, %v1388_v26  ;;  %v1563_v30 = vmul.f32 1.442695, %v1556_v48 }
 0x4f7   : > { %v1399_v31 = vsel %vm935_vm2, %v3368_v27, 0.0 }
 0x4f8   : > { %1400 = vadd.xlane.f32.xlu0 %v1399_v31  ;;  %2581 = vpow2.f32 %v1393_v28 }
 0x4f9   : > { %2583 = vpow2.f32 %v1559_v43 }
 0x4fb   : > { %v1383_v44 = vpop.xlane.xlu1 %1382  ;;  %v1238_v52 = vpop.xlane.xlu0 %1237 }
 0x4fc   : > { %v1389_v47 = vsub.f32 %v1373_v1, %v1383_v44 }
 0x4fe   : > { %v1395_v33 = vmul.f32 1.442695, %v1389_v47  ;;  %v3374_v49 = vpop.eup %2581 }
 0x4ff   : > { %v1402_v34 = vsel %vm935_vm2, %v3374_v49, 0.0  ;;  %v3378_v54 = vpop.eup %2583 }
 0x500   : > { %2585 = vpow2.f32 %v1395_v33  ;;  %1403 = vadd.xlane.f32.xlu1 %v1402_v34  ;;  %v1568_v58 = vsel %vm935_vm2, %v3378_v54, 0.0 }
 0x501   : > { %2587 = vpow2.f32 %v1563_v30 }
 0x503   : > { %v1386_v50 = vpop.xlane.xlu2 %1385  ;;  %v1241_v61 = vpop.xlane.xlu0 %1240 }
 0x504   : > { %v1390_v53 = vsub.f32 %v1374_v8, %v1386_v50 }
 0x506   : > { %v3380_v55 = vpop.eup %2585  ;;  %v1397_v56 = vmul.f32 1.442695, %v1390_v53 }
 0x507   : > { %v1405_v57 = vsel %vm935_vm2, %v3380_v55, 0.0  ;;  %v3386_v59 = vpop.eup %2587 }
 0x508   : > { %2589 = vpow2.f32 %v1397_v56  ;;  %1406 = vadd.xlane.f32.xlu2 %v1405_v57  ;;  %1569 = vadd.xlane.f32.xlu1 %v1568_v58  ;;  %v1574_v2 = vsel %vm935_vm2, %v3386_v59, 0.0 }
 0x509   : > { %2591 = vrcp.f32 %v1235_v20 }
 0x50a   : > { %2593 = vrcp.f32 %v1238_v52 }
 0x50b   : > { %v2522_v38 = vpop.permute.xlu2 %2521  ;;  %2595 = vrcp.f32 %v1241_v61 }
 0x50c   : > { %2541 = vrot.lane.b32.xlu0 %v3160_v35, %s2814_s17  ;;  %v2523_v3 = vunpack.i.l.bf16 %v2522_v38  ;;  %v2524_v8 = vunpack.i.h.bf16 %v2522_v38  ;;  %2597 = vpow2.f32 %v1561_v40 }
 0x50e   : > { %v3390_v60 = vpop.eup %2589 }
 0x50f   : > { %v1408_v51 = vsel %vm935_vm2, %v3390_v60, 0.0  ;;  %v2592_v35 = vpop.eup %2591 }
 0x510   : > { %1575 = vadd.xlane.f32.xlu2 %v1574_v2  ;;  %1409 = vadd.xlane.f32.xlu1 %v1408_v51  ;;  %v1249_v9 = vmul.f32 %v2592_v35, %v3312_v36  ;;  %v2594_v17 = vpop.eup %2593 }
 0x511   : > { %v1250_v13 = vmul.f32 %v2594_v17, %v3338_v0  ;;  %v2596_v36 = vpop.eup %2595 }
 0x512   : > { %v1251_v20 = vmul.f32 %v2596_v36, %v3344_v6  ;;  %v2598_v22 = vpop.eup %2597 }
 0x513   : > { %v2517_v62 = vpop.permute.xlu1 %2516  ;;  %v1571_v0 = vsel %vm935_vm2, %v2598_v22, 0.0 }
 0x514   : > { %v2518_v63 = vunpack.i.l.bf16 %v2517_v62  ;;  %v2519_v7 = vunpack.i.h.bf16 %v2517_v62 }
 0x516   : > { %v2527_v1 = vpop.permute.xlu0 %2526  ;;  %1289 = vmatpush.msrb.mxu0 %v2518_v63 }
 0x517   : > { %v2528_v39 = vunpack.i.l.bf16 %v2527_v1  ;;  %v2529_v5 = vunpack.i.h.bf16 %v2527_v1 }
 0x518   : > { %1290 = vmatpush.msrb.mxu0 %v2519_v7 }
 0x519   : > { %1455 = vmatpush.msrb.mxu1 %v2528_v39 }
 0x51a   : > { %1291 = vmatpush.msrb.mxu0 %v2523_v3  ;;  %v1703_v3 = vld [vmem:[%s3059_s20 + $0x18] sm:$0xff] }
 0x51b   : > { %1456 = vmatpush.msrb.mxu1 %v2529_v5  ;;  %v1702_v5 = vld [vmem:[%s3059_s20 + $0x10] sm:$0xff]  ;;  %1732 = vmatpush.msra.mxu2 %v1703_v3 }
 0x51c   : > { %1292 = vmatpush.msrb.mxu0 %v2524_v8  ;;  %v1701_v8 = vld [vmem:[%s3059_s20 + $0x8] sm:$0xff] }
 0x51d   : > { %2377 = vmatmul.msk.f32.vlgmr.msrb.gmra.mxu0 %vm935_vm2, %v1249_v9  ;;  %1733 = vmatpush.msra.mxu2 %v1702_v5  ;;  %v1700_v9 = vld [vmem:[%s3059_s20] sm:$0xff] }
 0x51e   : > { %v2532_v10 = vpop.permute.xlu0 %2531 }
 0x51f   : > { %v2533_v12 = vunpack.i.l.bf16 %v2532_v10  ;;  %v2534_v11 = vunpack.i.h.bf16 %v2532_v10  ;;  %1734 = vmatpush.msra.mxu2 %v1701_v8 }
 0x521   : > { %1621 = vmatpush.msra.mxu0 %v2533_v12  ;;  %1735 = vmatpush.msra.mxu2 %v1700_v9 }
 0x523   : > { %1622 = vmatpush.msra.mxu0 %v2534_v11 }
 0x525   : > { %2378 = vmatmul.msk.f32.gmra.mxu0 %vm935_vm2, %v1250_v13 }
 0x526   : > { %v2537_v15 = vpop.permute.xlu0 %2536 }
 0x527   : > { %v2538_v18 = vunpack.i.l.bf16 %v2537_v15  ;;  %v2539_v4 = vunpack.i.h.bf16 %v2537_v15 }
 0x529   : > { %1457 = vmatpush.msrb.mxu1 %v2538_v18 }
 0x52b   : > { %1458 = vmatpush.msrb.mxu1 %v2539_v4 }
 0x52d   : > { %2379 = vmatmul.msk.f32.gmra.mxu0 %vm935_vm2, %v1251_v20 }
 0x536   : > { %1572 = vadd.xlane.f32.xlu0 %v1571_v0 }
 0x53e   : > { %v1244_v23 = vpop.xlane.xlu1 %1243 }
 0x53f   : > { %2599 = vrcp.f32 %v1244_v23 }
 0x544   : > { %v1567_v26 = vpop.xlane.xlu2 %1566 }
 0x545   : > { %v2600_v46 = vpop.eup %2599 }
 0x546   : > { %v1252_v21 = vmul.f32 %v2600_v46, %v3358_v16 }
 0x548   : > { %2380 = vmatmul.msk.f32.gmra.mxu0 %vm935_vm2, %v1252_v21 }
 0x56b   : > { %v1401_v24 = vpop.xlane.xlu0 %1400 }
 0x56c   : > { %2601 = vrcp.f32 %v1401_v24 }
 0x572   : > { %v2602_v25 = vpop.eup %2601 }
 0x573   : > { %v1415_v6 = vmul.f32 %v2602_v25, %v3368_v27  ;;  %v1404_v28 = vpop.xlane.xlu1 %1403 }
 0x574   : > { %2603 = vrcp.f32 %v1404_v28 }
 0x575   : > { %2389 = vmatmul.msk.f32.vlgmr.msrb.gmra.mxu1 %vm935_vm2, %v1415_v6  ;;  %2605 = vrcp.f32 %v1567_v26 }
 0x57a   : > { %v2604_v29 = vpop.eup %2603 }
 0x57b   : > { %v1407_v31 = vpop.xlane.xlu2 %1406  ;;  %v1570_v37 = vpop.xlane.xlu1 %1569  ;;  %v1416_v43 = vmul.f32 %v2604_v29, %v3374_v49 }
 0x57c   : > { %2607 = vrcp.f32 %v1407_v31  ;;  %v2606_v44 = vpop.eup %2605 }
 0x57d   : > { %2390 = vmatmul.msk.f32.gmra.mxu1 %vm935_vm2, %v1416_v43  ;;  %2609 = vrcp.f32 %v1570_v37  ;;  %v1581_v33 = vmul.f32 %v2606_v44, %v3362_v19  ;;  %v2635_v37 = vld [vmem:[#allocation2] sm:$0xff] }
 0x57e   : > { %v2542_v16 = vpop.permute.xlu0 %2541 }
 0x57f   : > { %v2543_v47 = vunpack.i.l.bf16 %v2542_v16  ;;  %v2544_v48 = vunpack.i.h.bf16 %v2542_v16 }
 0x581   : > { %1623 = vmatpush.msra.mxu0 %v2543_v47  ;;  %v2636_v47 = vld [vmem:[#allocation2 + $0x8] sm:$0xff] }
 0x582   : > { %v2608_v27 = vpop.eup %2607 }
 0x583   : > { %1624 = vmatpush.msra.mxu0 %v2544_v48  ;;  %v1417_v34 = vmul.f32 %v2608_v27, %v3380_v55  ;;  %v1410_v30 = vpop.xlane.xlu1 %1409  ;;  %v2610_v49 = vpop.eup %2609 }
 0x584   : > { %2401 = vmatmul.msk.f32.vlgmr.msra.gmra.mxu0 %vm935_vm2, %v1581_v33  ;;  %2611 = vrcp.f32 %v1410_v30  ;;  %v1582_v50 = vmul.f32 %v2610_v49, %v3378_v54  ;;  %v1576_v57 = vpop.xlane.xlu2 %1575  ;;  %v2637_v30 = vld [vmem:[#allocation2 + $0x10] sm:$0xff] }
 0x585   : > { %2391 = vmatmul.msk.f32.gmra.mxu1 %vm935_vm2, %v1417_v34 }
 0x58a   : > { %v2612_v52 = vpop.eup %2611 }
 0x58b   : > { %v1418_v53 = vmul.f32 %v2612_v52, %v3390_v60 }
 0x58c   : > { %2402 = vmatmul.msk.f32.gmra.mxu0 %vm935_vm2, %v1582_v50 }
 0x58d   : > { %2392 = vmatmul.msk.f32.gmra.mxu1 %vm935_vm2, %v1418_v53 }
 0x59a   : > { %v1294_v19 = vpop.f32.mrf.mxu0 }
 0x59b   : > { %1642 = vrot.lane.b32.xlu1 %v1294_v19, %s2815_s30  ;;  %v2638_v19 = vld [vmem:[#allocation2 + $0x18] sm:$0xff] }
 0x5a2   : > { %v1297_v55 = vpop.f32.mrf.mxu0 }
 0x5a3   : > { %1644 = vrot.lane.b32.xlu2 %v1297_v55, %s2815_s30 }
 0x5a9   : > { %v1573_v56 = vpop.xlane.xlu0 %1572 }
 0x5aa   : > { %2613 = vrcp.f32 %v1573_v56  ;;  %v1300_v60 = vpop.f32.mrf.mxu0 }
 0x5ab   : > { %2615 = vrcp.f32 %v1576_v57  ;;  %v2818_v57 = vmov 32.0  }
 0x5ac   : > { %2617 = vrcp.f32 %v2818_v57 }
 0x5b0   : > { %v2614_v58 = vpop.eup %2613 }
 0x5b1   : > { %v1583_v61 = vmul.f32 %v2614_v58, %v2598_v22  ;;  %v2616_v54 = vpop.eup %2615 }
 0x5b2   : > { %v1584_v2 = vmul.f32 %v2616_v54, %v3386_v59  ;;  %v2618_v58 = vpop.eup %2617 }
 0x5b3   : > { %2403 = vmatmul.msk.f32.gmra.mxu0 %vm935_vm2, %v1583_v61  ;;  %v1768_v61 = vmul.f32 32.0, %v2618_v58  ;;  %vm1772_vm6 = vweird.f32 %v2618_v58 }
 0x5b5   : > { %v1769_v54 = vsub.f32 1.0, %v1768_v61 }
 0x5bb   : > { %2404 = vmatmul.msk.f32.gmra.mxu0 %vm935_vm2, %v1584_v2  ;;  %v1770_v2 = vmul.f32 %v2618_v58, %v1769_v54 }
 0x5c5   : > { %v1303_v62 = vpop.f32.mrf.mxu0 }
 0x5f2   : > { %v1460_v51 = vpop.f32.mrf.mxu1 }
 0x5f3   : > { %1658 = vrot.lane.b32.xlu2 %v1460_v51, %s2816_s1 }
 0x5fa   : > { %v1463_v63 = vpop.f32.mrf.mxu1 }
 0x5fb   : > { %1646 = vrot.lane.b32.xlu2 %v1300_v60, %s2815_s30  ;;  %1660 = vrot.lane.b32.xlu0 %v1463_v63, %s2816_s1  ;;  %v1771_v60 = vadd.f32 %v2618_v58, %v1770_v2 }
 0x5fd   : > { %v1645_v10 = vpop.permute.xlu2 %1644  ;;  %v3455_v51 = vsel %vm1772_vm6, %v2618_v58, %v1771_v60 }
 0x5fe   : > { %v1687_v36 = vsel %vm989_vm3, %v3316_v41, %v1645_v10 }
 0x601   : > { %v1626_v38 = vpop.f32.mrf.mxu0 }
 0x602   : > { %1674 = vrot.lane.b32.xlu1 %v1626_v38, %s2817_s5  ;;  %v1466_v59 = vpop.f32.mrf.mxu1 }
 0x609   : > { %v1629_v1 = vpop.f32.mrf.mxu0 }
 0x60a   : > { %1676 = vrot.lane.b32.xlu1 %v1629_v1, %s2817_s5  ;;  %v1469_v39 = vpop.f32.mrf.mxu1 }
 0x60d   : > { %v1643_v12 = vpop.permute.xlu1 %1642 }
 0x60e   : > { %v1686_v11 = vsel %vm989_vm3, %v3310_v32, %v1643_v12 }
 0x612   : > { %1662 = vrot.lane.b32.xlu1 %v1466_v59, %s2816_s1 }
 0x61a   : > { %1648 = vrot.lane.b32.xlu1 %v1303_v62, %s2815_s30 }
 0x630   : > { %v1632_v7 = vpop.f32.mrf.mxu0 }
 0x631   : > { %1678 = vrot.lane.b32.xlu2 %v1632_v7, %s2817_s5 }
 0x638   : > { %v1635_v35 = vpop.f32.mrf.mxu0 }
 0x639   : > { %1664 = vrot.lane.b32.xlu2 %v1469_v39, %s2816_s1  ;;  %1680 = vrot.lane.b32.xlu0 %v1635_v35, %s2817_s5 }
 0x64d   : > { %v1659_v17 = vpop.permute.xlu2 %1658 }
 0x64e   : > { %v1691_v13 = vsel %vm1690_vm4, %v1686_v11, %v1659_v17 }
 0x655   : > { %v1647_v32 = vpop.permute.xlu2 %1646 }
 0x656   : > { %v1688_v0 = vsel %vm989_vm3, %v3318_v42, %v1647_v32  ;;  %v2546_v42 = vld [vmem:[%s3684_s27] ss:$0 sm:$0xff] }
 0x66d   : > { %v1661_v18 = vpop.permute.xlu0 %1660 }
 0x66e   : > { %v1692_v40 = vsel %vm1690_vm4, %v1687_v36, %v1661_v18  ;;  %v1867_v36 = vld [vmem:[%s3093_s19 + $0x18] sm:$0xff] }
 0x66f   : > { %1896 = vmatpush.msra.mxu1 %v1867_v36 }
 0x674   : > { %v1675_v14 = vpop.permute.xlu1 %1674 }
 0x675   : > { %v1696_v15 = vsel %vm1695_vm5, %v1691_v13, %v1675_v14 }
 0x676   : > { %2405 = vmatmul.msk.f32.vlgmr.msra.gmra.mxu2 %vm935_vm2, %v1696_v15 }
 0x67c   : > { %v1677_v4 = vpop.permute.xlu1 %1676 }
 0x67d   : > { %v1697_v20 = vsel %vm1695_vm5, %v1692_v40, %v1677_v4  ;;  %v1866_v40 = vld [vmem:[%s3093_s19 + $0x10] sm:$0xff]  ;;  %v1865_v4 = vld [vmem:[%s3093_s19 + $0x8] sm:$0xff] }
 0x67e   : > { %2406 = vmatmul.msk.f32.gmra.mxu2 %vm935_vm2, %v1697_v20  ;;  %1897 = vmatpush.msra.mxu1 %v1866_v40  ;;  %v1864_v20 = vld [vmem:[%s3093_s19] sm:$0xff]  ;;  %v1919_v40 = vld [vmem:[%s3107_s22 + $0x10] sm:$0xff] }
 0x680   : > { %1898 = vmatpush.msra.mxu1 %v1865_v4  ;;  %v1918_v4 = vld [vmem:[%s3107_s22 + $0x8] sm:$0xff] }
 0x682   : > { %1899 = vmatpush.msra.mxu1 %v1864_v20  ;;  %v1917_v20 = vld [vmem:[%s3107_s22] sm:$0xff] }
 0x684   : > { %v1663_v22 = vpop.permute.xlu1 %1662 }
 0x685   : > { %v1693_v23 = vsel %vm1690_vm4, %v1688_v0, %v1663_v22 }
 0x68b   : > { %v1679_v46 = vpop.permute.xlu2 %1678 }
 0x68c   : > { %v1698_v21 = vsel %vm1695_vm5, %v1693_v23, %v1679_v46  ;;  %v1649_v41 = vpop.permute.xlu1 %1648 }
 0x68d   : > { %2407 = vmatmul.msk.f32.gmra.mxu2 %vm935_vm2, %v1698_v21  ;;  %v1689_v25 = vsel %vm989_vm3, %v3320_v45, %v1649_v41 }
 0x693   : > { %v1665_v24 = vpop.permute.xlu2 %1664 }
 0x694   : > { %v1694_v26 = vsel %vm1690_vm4, %v1689_v25, %v1665_v24  ;;  %vm1929_vm4 = vcmask 523264  }
 0x6ab   : > { %v1681_v6 = vpop.permute.xlu0 %1680 }
 0x6ac   : > { %v1699_v28 = vsel %vm1695_vm5, %v1694_v26, %v1681_v6 }
 0x6ad   : > { %2408 = vmatmul.msk.f32.gmra.mxu2 %vm935_vm2, %v1699_v28 }
 0x6f9   : > { %v1737_v29 = vpop.f32.mrf.mxu2 }
 0x6fa   : > { %v1738_v31 = vadd.f32 %v2546_v42, %v1737_v29 }
 0x6fc   : > { %v1749_v43 = vadd.f32 %v2635_v37, %v1738_v31  ;;  %v3488_v31 = vld [vmem:[%s3685_s21] ss:$0 sm:$0xff] }
 0x6fe   : > { %v1755_v16 = vsel %vm935_vm2, %v1749_v43, 0.0 }
 0x6ff   : > { %1756 = vadd.xlane.f32.xlu1 %v1755_v16 }
 0x701   : > { %v1740_v45 = vpop.f32.mrf.mxu2 }
 0x702   : > { %v1741_v44 = vadd.f32 %v2546_v42, %v1740_v45 }
 0x704   : > { %v1750_v48 = vadd.f32 %v2636_v47, %v1741_v44  ;;  %v2548_v44 = vld [vmem:[%s3686_s8] ss:$0 sm:$0xff]  ;;  %s3690_s8 = sld [smem:[#allocation20_spill]] (!%p2417_p10) }
 0x706   : > { %v1758_v27 = vsel %vm935_vm2, %v1750_v48, 0.0 }
 0x707   : > { %1759 = vadd.xlane.f32.xlu2 %v1758_v27 }
 0x710   : > { %v1743_v33 = vpop.f32.mrf.mxu2 }
 0x711   : > { %v1744_v34 = vadd.f32 %v2546_v42, %v1743_v33 }
 0x713   : > { %v1751_v49 = vadd.f32 %v2637_v30, %v1744_v34 }
 0x715   : > { %v1761_v50 = vsel %vm935_vm2, %v1751_v49, 0.0 }
 0x716   : > { %1762 = vadd.xlane.f32.xlu0 %v1761_v50 }
 0x730   : > { %v1746_v52 = vpop.f32.mrf.mxu2 }
 0x731   : > { %v1747_v53 = vadd.f32 %v2546_v42, %v1746_v52 }
 0x733   : > { %v1752_v55 = vadd.f32 %v2638_v19, %v1747_v53 }
 0x735   : > { %v1764_v56 = vsel %vm935_vm2, %v1752_v55, 0.0 }
 0x736   : > { %1765 = vadd.xlane.f32.xlu2 %v1764_v56 }
 0x772   : > { %v1757_v62 = vpop.xlane.xlu1 %1756 }
 0x773   : > { %v1774_v63 = vmul.f32 %v3455_v51, %v1757_v62 }
 0x775   : > { %v1778_v38 = vsub.f32 %v1749_v43, %v1774_v63 }
 0x777   : > { %v1782_v1 = vmul.f32 %v1778_v38, %v1778_v38 }
 0x779   : > { %v1786_v59 = vsel %vm935_vm2, %v1782_v1, 0.0  ;;  %v1923_v1 = vld [vmem:[%s3107_s22 + $0x30] sm:$0xff] }
 0x77a   : > { %1787 = vadd.xlane.f32.xlu1 %v1786_v59  ;;  %v1760_v7 = vpop.xlane.xlu2 %1759  ;;  %v1922_v59 = vld [vmem:[%s3107_s22 + $0x28] sm:$0xff] }
 0x77b   : > { %v1775_v39 = vmul.f32 %v3455_v51, %v1760_v7 }
 0x77d   : > { %v3460_v35 = vsub.f32 %v1750_v48, %v1775_v39 }
 0x77f   : > { %v1783_v3 = vmul.f32 %v3460_v35, %v3460_v35 }
 0x781   : > { %v1789_v5 = vsel %vm935_vm2, %v1783_v3, 0.0 }
 0x782   : > { %1790 = vadd.xlane.f32.xlu0 %v1789_v5  ;;  %v1920_v5 = vld [vmem:[%s3107_s22 + $0x18] sm:$0xff] }
 0x789   : > { %v1763_v8 = vpop.xlane.xlu0 %1762 }
 0x78a   : > { %v1776_v9 = vmul.f32 %v3455_v51, %v1763_v8 }
 0x78c   : > { %v3466_v10 = vsub.f32 %v1751_v49, %v1776_v9 }
 0x78e   : > { %v1784_v12 = vmul.f32 %v3466_v10, %v3466_v10 }
 0x790   : > { %v1792_v17 = vsel %vm935_vm2, %v1784_v12, 0.0 }
 0x791   : > { %1793 = vadd.xlane.f32.xlu2 %v1792_v17 }
 0x7a9   : > { %v1766_v11 = vpop.xlane.xlu2 %1765 }
 0x7aa   : > { %v1777_v13 = vmul.f32 %v3455_v51, %v1766_v11 }
 0x7ac   : > { %v3472_v14 = vsub.f32 %v1752_v55, %v1777_v13 }
 0x7ae   : > { %v1785_v15 = vmul.f32 %v3472_v14, %v3472_v14 }
 0x7b0   : > { %v1795_v18 = vsel %vm935_vm2, %v1785_v15, 0.0 }
 0x7b1   : > { %1796 = vadd.xlane.f32.xlu1 %v1795_v18 }
 0x7ed   : > { %v1788_v32 = vpop.xlane.xlu1 %1787 }
 0x7ee   : > { %v1798_v22 = vmul.f32 %v1788_v32, %v3455_v51  ;;  %v2549_v32 = vld [vmem:[%s841_s6] ss:$0 sm:$0xff] }
 0x7f0   : > { %v1802_v0 = vadd.f32 1e-05, %v1798_v22 }
 0x7f2   : > { %2619 = vrsqrt.f32 %v1802_v0  ;;  %vm1812_vm8 = vweird.f32 %v1802_v0 }
 0x7f5   : > { %v1791_v23 = vpop.xlane.xlu0 %1790 }
 0x7f6   : > { %v1799_v46 = vmul.f32 %v1791_v23, %v3455_v51 }
 0x7f8   : > { %v2620_v21 = vpop.eup %2619  ;;  %v1803_v41 = vadd.f32 1e-05, %v1799_v46 }
 0x7f9   : > { %v1807_v24 = vmul.f32 %v2620_v21, %v1802_v0  ;;  %vm1813_vm7 = vweird.f32 %v2620_v21 }
 0x7fa   : > { %2621 = vrsqrt.f32 %v1803_v41  ;;  %vm1814_vm9 = vmor %vm1812_vm8, %vm1813_vm7  ;;  %vm1822_vm11 = vweird.f32 %v1803_v41 }
 0x7fb   : > { %v1808_v25 = vmul.f32 %v2620_v21, %v1807_v24 }
 0x7fd   : > { %v1809_v26 = vmul.f32 0.5, %v1808_v25 }
 0x7ff   : > { %v1810_v6 = vsub.f32 1.5, %v1809_v26 }
 0x800   : > { %v2622_v28 = vpop.eup %2621 }
 0x801   : > { %v1811_v42 = vmul.f32 %v2620_v21, %v1810_v6  ;;  %v1817_v29 = vmul.f32 %v2622_v28, %v1803_v41  ;;  %vm1823_vm10 = vweird.f32 %v2622_v28 }
 0x802   : > { %vm1824_vm12 = vmor %vm1822_vm11, %vm1823_vm10 }
 0x803   : > { %v1815_v37 = vsel %vm1814_vm9, %v2620_v21, %v1811_v42  ;;  %v1818_v43 = vmul.f32 %v2622_v28, %v1817_v29  ;;  %v2550_v42 = vld [vmem:[%s844_s29] ss:$0 sm:$0xff]  ;;  %s3691_s29 = sld [smem:[#allocation29_spill]] (!%p2417_p10) }
 0x804   : > { %v1846_v16 = vmul.f32 %v1815_v37, %v1778_v38  ;;  %v1794_v45 = vpop.xlane.xlu2 %1793  ;;  %v1924_v38 = vld [vmem:[%s3107_s22 + $0x38] sm:$0xff] }
 0x805   : > { %v1819_v47 = vmul.f32 0.5, %v1818_v43  ;;  %v1800_v48 = vmul.f32 %v1794_v45, %v3455_v51  ;;  %1950 = vmatpush.msra.mxu3 %v1924_v38 }
 0x806   : > { %v1853_v27 = vmul.f32 %v3488_v31, %v1846_v16 }
 0x807   : > { %v1820_v33 = vsub.f32 1.5, %v1819_v47  ;;  %v1804_v34 = vadd.f32 1e-05, %v1800_v48  ;;  %1951 = vmatpush.msra.mxu3 %v1923_v1 }
 0x808   : > { %v3497_v30 = vadd.f32 %v2548_v44, %v1853_v27 }
 0x809   : > { %v1821_v49 = vmul.f32 %v2622_v28, %v1820_v33  ;;  %2623 = vrsqrt.f32 %v1804_v34  ;;  %vm1832_vm14 = vweird.f32 %v1804_v34  ;;  %1952 = vmatpush.msra.mxu3 %v1922_v59 }
 0x80a   : > { %2409 = vmatmul.msk.f32.vlgmr.msra.gmra.mxu1 %vm935_vm2, %v3497_v30 }
 0x80b   : > { %v1825_v50 = vsel %vm1824_vm12, %v2622_v28, %v1821_v49 }
 0x80c   : > { %v1847_v52 = vmul.f32 %v1825_v50, %v3460_v35  ;;  %v1921_v35 = vld [vmem:[%s3107_s22 + $0x20] sm:$0xff] }
 0x80d   : > { %1953 = vmatpush.msra.mxu3 %v1921_v35 }
 0x80e   : > { %v1854_v53 = vmul.f32 %v3488_v31, %v1847_v52 }
 0x80f   : > { %v2624_v19 = vpop.eup %2623  ;;  %1954 = vmatpush.msra.mxu3 %v1920_v5 }
 0x810   : > { %v1827_v55 = vmul.f32 %v2624_v19, %v1804_v34  ;;  %v3503_v56 = vadd.f32 %v2548_v44, %v1854_v53  ;;  %vm1833_vm13 = vweird.f32 %v2624_v19 }
 0x811   : > { %vm1834_vm15 = vmor %vm1832_vm14, %vm1833_vm13  ;;  %1955 = vmatpush.msra.mxu3 %v1919_v40 }
 0x812   : > { %v1828_v57 = vmul.f32 %v2624_v19, %v1827_v55  ;;  %2410 = vmatmul.msk.f32.gmra.mxu1 %vm935_vm2, %v3503_v56 }
 0x813   : > { %1956 = vmatpush.msra.mxu3 %v1918_v4 }
 0x814   : > { %v1829_v58 = vmul.f32 0.5, %v1828_v57 }
 0x815   : > { %1957 = vmatpush.msra.mxu3 %v1917_v20 }
 0x816   : > { %v1830_v61 = vsub.f32 1.5, %v1829_v58 }
 0x818   : > { %v1831_v54 = vmul.f32 %v2624_v19, %v1830_v61 }
 0x81a   : > { %v1835_v2 = vsel %vm1834_vm15, %v2624_v19, %v1831_v54 }
 0x81b   : > { %v1848_v60 = vmul.f32 %v1835_v2, %v3466_v10 }
 0x81d   : > { %v1855_v62 = vmul.f32 %v3488_v31, %v1848_v60 }
 0x81f   : > { %v3509_v63 = vadd.f32 %v2548_v44, %v1855_v62 }
 0x821   : > { %2411 = vmatmul.msk.f32.gmra.mxu1 %vm935_vm2, %v3509_v63 }
 0x824   : > { %v1797_v7 = vpop.xlane.xlu1 %1796 }
 0x825   : > { %v1801_v39 = vmul.f32 %v1797_v7, %v3455_v51 }
 0x827   : > { %v1805_v3 = vadd.f32 1e-05, %v1801_v39 }
 0x829   : > { %2625 = vrsqrt.f32 %v1805_v3  ;;  %vm1842_vm1 = vweird.f32 %v1805_v3 }
 0x82f   : > { %v2626_v8 = vpop.eup %2625 }
 0x830   : > { %v1837_v9 = vmul.f32 %v2626_v8, %v1805_v3  ;;  %vm1843_vm0 = vweird.f32 %v2626_v8 }
 0x831   : > { %vm1844_vm3 = vmor %vm1842_vm1, %vm1843_vm0 }
 0x832   : > { %v1838_v10 = vmul.f32 %v2626_v8, %v1837_v9 }
 0x834   : > { %v1839_v12 = vmul.f32 0.5, %v1838_v10 }
 0x836   : > { %v1840_v17 = vsub.f32 1.5, %v1839_v12 }
 0x838   : > { %v1841_v11 = vmul.f32 %v2626_v8, %v1840_v17 }
 0x83a   : > { %v1845_v13 = vsel %vm1844_vm3, %v2626_v8, %v1841_v11 }
 0x83b   : > { %v1849_v15 = vmul.f32 %v1845_v13, %v3472_v14 }
 0x83d   : > { %v1856_v18 = vmul.f32 %v3488_v31, %v1849_v15 }
 0x83f   : > { %v1863_v36 = vadd.f32 %v2548_v44, %v1856_v18 }
 0x841   : > { %2412 = vmatmul.msk.f32.gmra.mxu1 %vm935_vm2, %v1863_v36 }
 0x887   : > { %v1901_v22 = vpop.f32.mrf.mxu1 }
 0x888   : > { %v1902_v0 = vadd.f32 %v2549_v32, %v1901_v22  ;;  %v2551_v22 = vld [vmem:[%s847_s28] ss:$0 sm:$0xff]  ;;  %s3689_s28 = sld [smem:[#allocation28_spill]] (!%p2417_p10) }
 0x88a   : > { %v1913_v14 = vmax.f32 %v1902_v0, 0.0 }
 0x88c   : > { %2413 = vmatmul.msk.f32.vlgmr.msra.gmra.mxu3 %vm1929_vm4, %v1913_v14 }
 0x88f   : > { %v1904_v23 = vpop.f32.mrf.mxu1 }
 0x890   : > { %v1905_v46 = vadd.f32 %v2549_v32, %v1904_v23  ;;  %v2552_v23 = vld [vmem:[%s850_s14] ss:$0 sm:$0xff] }
 0x892   : > { %v1914_v21 = vmax.f32 %v1905_v46, 0.0 }
 0x894   : > { %2414 = vmatmul.msk.f32.gmra.mxu3 %vm1929_vm4, %v1914_v21 }
 0x89e   : > { %v1907_v41 = vpop.f32.mrf.mxu1 }
 0x89f   : > { %v1908_v24 = vadd.f32 %v2549_v32, %v1907_v41 }
 0x8a1   : > { %v1915_v25 = vmax.f32 %v1908_v24, 0.0 }
 0x8a3   : > { %2415 = vmatmul.msk.f32.gmra.mxu3 %vm1929_vm4, %v1915_v25 }
 0x8be   : > { %v1910_v26 = vpop.f32.mrf.mxu1 }
 0x8bf   : > { %v1911_v6 = vadd.f32 %v2549_v32, %v1910_v26 }
 0x8c1   : > { %v1916_v28 = vmax.f32 %v1911_v6, 0.0 }
 0x8c3   : > { %2416 = vmatmul.msk.f32.gmra.mxu3 %vm1929_vm4, %v1916_v28 }
 0x90f   : > { %v1959_v29 = vpop.f32.mrf.mxu3 }
 0x910   : > { %v1960_v31 = vadd.f32 %v2550_v42, %v1959_v29 }
 0x912   : > { %v1971_v37 = vadd.f32 %v1960_v31, %v3497_v30 }
 0x914   : > { %v1977_v43 = vsel %vm935_vm2, %v1971_v37, 0.0 }
 0x915   : > { %1978 = vadd.xlane.f32.xlu0 %v1977_v43 }
 0x917   : > { %v1962_v16 = vpop.f32.mrf.mxu3 }
 0x918   : > { %v1963_v45 = vadd.f32 %v2550_v42, %v1962_v16 }
 0x91a   : > { %v1972_v44 = vadd.f32 %v1963_v45, %v3503_v56 }
 0x91c   : > { %v1980_v47 = vsel %vm935_vm2, %v1972_v44, 0.0 }
 0x91d   : > { %1981 = vadd.xlane.f32.xlu2 %v1980_v47 }
 0x926   : > { %v1965_v48 = vpop.f32.mrf.mxu3 }
 0x927   : > { %v1966_v27 = vadd.f32 %v2550_v42, %v1965_v48 }
 0x929   : > { %v1973_v33 = vadd.f32 %v1966_v27, %v3509_v63 }
 0x92b   : > { %v1983_v34 = vsel %vm935_vm2, %v1973_v33, 0.0 }
 0x92c   : > { %1984 = vadd.xlane.f32.xlu1 %v1983_v34 }
 0x946   : > { %v1968_v49 = vpop.f32.mrf.mxu3 }
 0x947   : > { %v1969_v50 = vadd.f32 %v2550_v42, %v1968_v49 }
 0x949   : > { %v1974_v30 = vadd.f32 %v1969_v50, %v1863_v36 }
 0x94b   : > { %v1986_v52 = vsel %vm935_vm2, %v1974_v30, 0.0 }
 0x94c   : > { %1987 = vadd.xlane.f32.xlu0 %v1986_v52 }
 0x988   : > { %v1979_v53 = vpop.xlane.xlu0 %1978 }
 0x989   : > { %v1989_v19 = vmul.f32 %v1979_v53, %v3455_v51 }
 0x98b   : > { %v1993_v55 = vsub.f32 %v1971_v37, %v1989_v19 }
 0x98d   : > { %v1997_v56 = vmul.f32 %v1993_v55, %v1993_v55 }
 0x98f   : > { %v2001_v57 = vsel %vm935_vm2, %v1997_v56, 0.0 }
 0x990   : > { %v1982_v58 = vpop.xlane.xlu2 %1981  ;;  %2002 = vadd.xlane.f32.xlu2 %v2001_v57 }
 0x991   : > { %v1990_v61 = vmul.f32 %v1982_v58, %v3455_v51 }
 0x993   : > { %v1994_v54 = vsub.f32 %v1972_v44, %v1990_v61 }
 0x995   : > { %v1998_v2 = vmul.f32 %v1994_v54, %v1994_v54 }
 0x997   : > { %v2004_v60 = vsel %vm935_vm2, %v1998_v2, 0.0 }
 0x998   : > { %2005 = vadd.xlane.f32.xlu1 %v2004_v60 }
 0x99f   : > { %v1985_v62 = vpop.xlane.xlu1 %1984 }
 0x9a0   : > { %v1991_v63 = vmul.f32 %v1985_v62, %v3455_v51 }
 0x9a2   : > { %v3547_v38 = vsub.f32 %v1973_v33, %v1991_v63 }
 0x9a4   : > { %v1999_v1 = vmul.f32 %v3547_v38, %v3547_v38 }
 0x9a6   : > { %v2007_v59 = vsel %vm935_vm2, %v1999_v1, 0.0 }
 0x9a7   : > { %2008 = vadd.xlane.f32.xlu0 %v2007_v59 }
 0x9bf   : > { %v1988_v7 = vpop.xlane.xlu0 %1987 }
 0x9c0   : > { %v1992_v39 = vmul.f32 %v1988_v7, %v3455_v51 }
 0x9c2   : > { %v3553_v35 = vsub.f32 %v1974_v30, %v1992_v39 }
 0x9c4   : > { %v2000_v3 = vmul.f32 %v3553_v35, %v3553_v35 }
 0x9c6   : > { %v2010_v5 = vsel %vm935_vm2, %v2000_v3, 0.0 }
 0x9c7   : > { %2011 = vadd.xlane.f32.xlu2 %v2010_v5 }
 0xa03   : > { %v2003_v8 = vpop.xlane.xlu2 %2002 }
 0xa04   : > { %v2013_v9 = vmul.f32 %v2003_v8, %v3455_v51 }
 0xa06   : > { %v2017_v10 = vadd.f32 1e-05, %v2013_v9 }
 0xa08   : > { %2627 = vrsqrt.f32 %v2017_v10  ;;  %vm2027_vm6 = vweird.f32 %v2017_v10 }
 0xa0b   : > { %v2006_v12 = vpop.xlane.xlu1 %2005 }
 0xa0c   : > { %v2014_v17 = vmul.f32 %v2006_v12, %v3455_v51 }
 0xa0e   : > { %v2628_v11 = vpop.eup %2627  ;;  %v2018_v13 = vadd.f32 1e-05, %v2014_v17 }
 0xa0f   : > { %v2022_v15 = vmul.f32 %v2628_v11, %v2017_v10  ;;  %vm2028_vm5 = vweird.f32 %v2628_v11 }
 0xa10   : > { %2629 = vrsqrt.f32 %v2018_v13  ;;  %vm2029_vm7 = vmor %vm2027_vm6, %vm2028_vm5  ;;  %vm2037_vm9 = vweird.f32 %v2018_v13 }
 0xa11   : > { %v2023_v18 = vmul.f32 %v2628_v11, %v2022_v15 }
 0xa13   : > { %v2024_v36 = vmul.f32 0.5, %v2023_v18 }
 0xa15   : > { %v2025_v40 = vsub.f32 1.5, %v2024_v36 }
 0xa16   : > { %v2630_v4 = vpop.eup %2629 }
 0xa17   : > { %v2026_v20 = vmul.f32 %v2628_v11, %v2025_v40  ;;  %v2032_v32 = vmul.f32 %v2630_v4, %v2018_v13  ;;  %vm2038_vm8 = vweird.f32 %v2630_v4 }
 0xa18   : > { %vm2039_vm10 = vmor %vm2037_vm9, %vm2038_vm8 }
 0xa19   : > { %v2030_v0 = vsel %vm2029_vm7, %v2628_v11, %v2026_v20  ;;  %v2033_v14 = vmul.f32 %v2630_v4, %v2032_v32 }
 0xa1a   : > { %v2061_v46 = vmul.f32 %v2030_v0, %v1993_v55  ;;  %v2009_v21 = vpop.xlane.xlu0 %2008 }
 0xa1b   : > { %v2034_v41 = vmul.f32 0.5, %v2033_v14  ;;  %v2015_v24 = vmul.f32 %v2009_v21, %v3455_v51 }
 0xa1c   : > { %v2068_v25 = vmul.f32 %v2551_v22, %v2061_v46 }
 0xa1d   : > { %v2035_v26 = vsub.f32 1.5, %v2034_v41  ;;  %v2019_v6 = vadd.f32 1e-05, %v2015_v24 }
 0xa1e   : > { %v2075_v28 = vadd.f32 %v2552_v23, %v2068_v25 }
 0xa1f   : > { %v2036_v42 = vmul.f32 %v2630_v4, %v2035_v26  ;;  %2631 = vrsqrt.f32 %v2019_v6  ;;  %vm2047_vm12 = vweird.f32 %v2019_v6 }
 0xa20   : > { %2079 = vst.msk [vmem:[#allocation2] sm:$0xff] %vm935_vm2, %v2075_v28 }
 0xa21   : > { %v2040_v29 = vsel %vm2039_vm10, %v2630_v4, %v2036_v42 }
 0xa22   : > { %v2062_v31 = vmul.f32 %v2040_v29, %v1994_v54 }
 0xa24   : > { %v2069_v37 = vmul.f32 %v2551_v22, %v2062_v31 }
 0xa25   : > { %v2632_v43 = vpop.eup %2631 }
 0xa26   : > { %v2076_v16 = vadd.f32 %v2552_v23, %v2069_v37  ;;  %v2042_v45 = vmul.f32 %v2632_v43, %v2019_v6  ;;  %vm2048_vm11 = vweird.f32 %v2632_v43 }
 0xa27   : > { %vm2049_vm13 = vmor %vm2047_vm12, %vm2048_vm11 }
 0xa28   : > { %2080 = vst.msk [vmem:[#allocation2 + $0x8] sm:$0xff] %vm935_vm2, %v2076_v16  ;;  %v2043_v44 = vmul.f32 %v2632_v43, %v2042_v45 }
 0xa2a   : > { %v2044_v47 = vmul.f32 0.5, %v2043_v44 }
 0xa2c   : > { %v2045_v48 = vsub.f32 1.5, %v2044_v47 }
 0xa2e   : > { %v2046_v27 = vmul.f32 %v2632_v43, %v2045_v48 }
 0xa30   : > { %v2050_v33 = vsel %vm2049_vm13, %v2632_v43, %v2046_v27 }
 0xa31   : > { %v2063_v34 = vmul.f32 %v2050_v33, %v3547_v38 }
 0xa33   : > { %v2070_v49 = vmul.f32 %v2551_v22, %v2063_v34 }
 0xa35   : > { %v2077_v50 = vadd.f32 %v2552_v23, %v2070_v49 }
 0xa37   : > { %2081 = vst.msk [vmem:[#allocation2 + $0x10] sm:$0xff] %vm935_vm2, %v2077_v50 }
 0xa3a   : > { %v2012_v30 = vpop.xlane.xlu2 %2011 }
 0xa3b   : > { %v2016_v52 = vmul.f32 %v2012_v30, %v3455_v51 }
 0xa3d   : > { %v2020_v53 = vadd.f32 1e-05, %v2016_v52 }
 0xa3f   : > { %2633 = vrsqrt.f32 %v2020_v53  ;;  %vm2057_vm15 = vweird.f32 %v2020_v53 }
 0xa45   : > { %v2634_v19 = vpop.eup %2633 }
 0xa46   : > { %v2052_v55 = vmul.f32 %v2634_v19, %v2020_v53  ;;  %vm2058_vm14 = vweird.f32 %v2634_v19 }
 0xa47   : > { %vm2059_vm0 = vmor %vm2057_vm15, %vm2058_vm14 }
 0xa48   : > { %v2053_v56 = vmul.f32 %v2634_v19, %v2052_v55 }
 0xa4a   : > { %v2054_v57 = vmul.f32 0.5, %v2053_v56 }
 0xa4c   : > { %v2055_v58 = vsub.f32 1.5, %v2054_v57 }
 0xa4e   : > { %v2056_v61 = vmul.f32 %v2634_v19, %v2055_v58 }
 0xa50   : > { %v2060_v54 = vsel %vm2059_vm0, %v2634_v19, %v2056_v61 }
 0xa51   : > { %v2064_v2 = vmul.f32 %v2060_v54, %v3553_v35 }
 0xa53   : > { %v2071_v60 = vmul.f32 %v2551_v22, %v2064_v2  ;;  %2086 = sbr.rel (%p2417_p10) target bundleno = 2910 (0xb5e), region = 120 }
 0xa55   : > { %v2078_v62 = vadd.f32 %v2552_v23, %v2071_v60 }
 0xa57   : > { %2082 = vst.msk [vmem:[#allocation2 + $0x18] sm:$0xff] %vm935_vm2, %v2078_v62 }
 0xa58   : > { %2103 = vmatpush.msra.mxu0 %v2078_v62  ;;  %v2114_v51 = vld [vmem:[%s3689_s28 + $0x18] sm:$0xff]  ;;  %v2113_v63 = vld [vmem:[%s3689_s28 + $0x10] sm:$0xff]  ;;  %v2112_v38 = vld [vmem:[%s3689_s28 + $0x8] sm:$0xff]  ;;  %vm2142_vm1 = vcmask 58368  }
 0xa59   : > { %2134 = vmatpush.msra.mxu1 %v2114_v51  ;;  %v2087_v1 = vld [vmem:[%s3690_s8] sm:$0x3] }
 0xa5a   : > { %2104 = vmatpush.msra.mxu0 %v2077_v50  ;;  %v2111_v59 = vld [vmem:[%s3689_s28] sm:$0xff] }
 0xa5b   : > { %2135 = vmatpush.msra.mxu1 %v2113_v63  ;;  %v2639_v39 = vld [vmem:[%s3691_s29] ss:$0 sm:$0xff] }
 0xa5c   : > { %2105 = vmatpush.msra.mxu0 %v2076_v16 }
 0xa5d   : > { %2136 = vmatpush.msra.mxu1 %v2112_v38 }
 0xa5e   : > { %2106 = vmatpush.msra.mxu0 %v2075_v28 }
 0xa5f   : > { %2418 = vmatmul.msk.f32.vlgmr.msra.gmra.mxu0 %vm935_vm2, %v2087_v1  ;;  %2137 = vmatpush.msra.mxu1 %v2111_v59 }
 0xadc   : > { %v2108_v7 = vpop.f32.mrf.mxu0 }
 0xadd   : > { %2419 = vmatmul.msk.f32.vlgmr.msra.gmra.mxu1 %vm935_vm2, %v2108_v7 }
 0xb5a   : > { %v2139_v35 = vpop.f32.mrf.mxu1 }
 0xb5b   : > { %v2140_v3 = vadd.f32 %v2639_v39, %v2139_v35 }
 0xb5d   : > { %2143 = vst.msk [vmem:[#allocation9] sm:$0x3] %vm2142_vm1, %v2140_v3 }
 0xb5e PF: > { %p2452_p5 = scmp.eq.s32.totalorder %s2944_s2, 1  ;;  %s2819_s30 = smov [#allocation9]  }
 0xb5f   : > { %s2150_s1 = sshll.u32 %s2819_s30, 4  ;;  %s3692_s24 = sld [smem:[#allocation30_spill]]  ;;  %s2151_s1 = int_to_ptr.vmem [resolvable:$true] %s2150_s1 }
 0xb65   : > { %s2152_s14 = sshll.u32 %s3692_s24, 4  ;;  %s2153_s14 = int_to_ptr.hbm [resolvable:$true] %s2152_s14 }
 0xb66   : > { %2438 = dma.vmem_to_hbm [thread:$0]  (%p2452_p5), %s2151_s1, 32, %s2153_s14, [#allocation5]  }
 0xb67   : > { %2783 = dma.done.wait (%p2452_p5), [#allocation5], 32  }
 0xb68   : > { %2785 = vsyncadd (%p2452_p5), [#allocation5], 4294967264 }
 0xb69 PF: > { %s3693_s24 = sld [smem:[#allocation15_spill]] }
 0xb6a   : > { %s3694_s1 = sld [smem:[#allocation13_spill]] }
 0xb6b   : > { %s3695_s22 = sld [smem:[#allocation14_spill]] }
 0xb6c   : > { %s3696_s23 = sld [smem:[#allocation16_spill]] }
 0xb6f   : > { %p34_p13 = scmp.ge.s32.totalorder %s3693_s24, 4  }
 0xb71   :  { %36 = sbr.rel (!%p34_p13) target bundleno = 21 (0x15), region = 196 }
 0xb76   :  { %2166 = vsyncpa [#allocation4], 1 }
 0xb77   :  { %2168 = vsyncpa [#allocation4 + $0x1], 1 }
 0xb78   :  { %2169 = vsyncpa [#allocation7], 1 }
 0xb79   :  { %2171 = vsyncpa [#allocation7 + $0x1], 1 }
 0xb7a   :  { %2172 = vsyncpa [#allocation5], 1 }
 0xb7b   :  { %2174 = vsyncpa [#allocation5 + $0x1], 1 }

</bundles_post_ra>
